<compile_context>
chip_gen: v7x
topology: tpu7x:2x2x1
jax: 0.10.0
libtpu: 0.0.40
codegen_flags: <defaults>
</compile_context>

<pallas_src>
import functools

import jax
import jax.numpy as jnp
from jax.experimental import pallas as pl
from jax.experimental.pallas import tpu as pltpu

VOCAB_SIZE = 15000
EMBED_DIM = 64
NUM_CLASS = 2
KSIZE = 15
STRIDE = 7
CONV_CH = 64
HIDDEN = 128
LANE = 128
GCOLS = STRIDE * EMBED_DIM          # 448 lanes per stride-group of tokens


def _conv_len(l):
    return (l - KSIZE) // STRIDE + 1


# ------------------------------ Pallas kernel ------------------------------ #

def gcnn_fused_kernel(emb_ref, w1c_ref, b1c_ref, s2_ref, w2c_ref, b2c_ref,
                      wl1_ref, bl1_ref, wl2_ref, bl2_ref, o_ref, *, bb, l1, l2):
    """Whole forward pass for a block of `bb` examples, entirely in VMEM.

    emb_ref : (bb, l1+2, 448) bf16  embedding grouped by stride (7 tokens/row)
    w1c_ref : (960, 128) bf16       conv1 fused [WA1|WB1], rows = k*64 + c_in
    s2_ref  : (15*l2, l1) bf16      0/1 selector: row j*l2+t picks h1 row 7t+j
    w2c_ref : (960, 128) bf16       conv2 fused [WA2|WB2]
    wl1_ref : (64, 128) bf16        Linear1 (transposed)
    wl2_ref : (128, 128) bf16       Linear2 (transposed, zero-padded to 128 lanes)
    o_ref   : (bb, 1, 128) f32      lane-dense logits (first NUM_CLASS lanes valid)
    """
    # Conv1 weight split by stride-group of taps: k=0..6 | k=7..13 | k=14.
    w1_a = w1c_ref[0:STRIDE * EMBED_DIM, :]                          # (448, 128)
    w1_b = w1c_ref[STRIDE * EMBED_DIM:2 * STRIDE * EMBED_DIM, :]     # (448, 128)
    w1_c = w1c_ref[2 * STRIDE * EMBED_DIM:KSIZE * EMBED_DIM, :]      # (64, 128)
    b1c = b1c_ref[...]
    s2 = s2_ref[...]
    b2c = b2c_ref[...]
    wl1 = wl1_ref[...]
    bl1 = bl1_ref[...]
    wl2 = wl2_ref[...]
    bl2 = bl2_ref[...]

    for i in range(bb):
        # ---- gated conv1: window t = tokens [7t, 7t+15) = group t, group t+1
        #      and the first token of group t+2 -> 3 shifted contiguous slices.
        x0 = emb_ref[i, pl.ds(0, l1), :]                             # (l1, 448)
        x1 = emb_ref[i, pl.ds(1, l1), :]                             # (l1, 448)
        x2 = emb_ref[i, pl.ds(2, l1), 0:EMBED_DIM]                   # (l1, 64)
        pre1 = (jnp.dot(x0, w1_a, preferred_element_type=jnp.float32)
                + jnp.dot(x1, w1_b, preferred_element_type=jnp.float32)
                + jnp.dot(x2, w1_c, preferred_element_type=jnp.float32)
                + b1c)                                               # (l1, 128) f32
        h1 = (pre1[:, :CONV_CH]
              * jax.nn.sigmoid(pre1[:, CONV_CH:])).astype(jnp.bfloat16)   # (l1, 64)

        # ---- gated conv2: in-VMEM im2col via a 0/1 selector matmul, then one
        #      (l2, 64) x (64, 128) matmul per tap (contiguous slices only). ---
        h1_im = jnp.dot(s2, h1,
                        preferred_element_type=jnp.float32).astype(jnp.bfloat16)
        acc = jnp.zeros((l2, 2 * CONV_CH), jnp.float32)
        for j in range(KSIZE):
            acc = acc + jnp.dot(h1_im[j * l2:(j + 1) * l2, :],
                                w2c_ref[j * CONV_CH:(j + 1) * CONV_CH, :],
                                preferred_element_type=jnp.float32)
        pre2 = acc + b2c                                             # (l2, 128) f32
        h2 = pre2[:, :CONV_CH] * jax.nn.sigmoid(pre2[:, CONV_CH:])   # (l2, 64) f32

        # ---- mean pool over time + Linear(64->128) + Linear(128->2, padded) --
        pooled = (jnp.sum(h2, axis=0, keepdims=True)
                  * (1.0 / l2)).astype(jnp.bfloat16)                 # (1, 64)
        z1 = jnp.dot(pooled, wl1, preferred_element_type=jnp.float32) + bl1
        z2 = jnp.dot(z1.astype(jnp.bfloat16), wl2,
                     preferred_element_type=jnp.float32) + bl2       # (1, 128)
        o_ref[i] = z2


# -------------------------------- wrappers --------------------------------- #

def _fuse_conv_weights(wa, ba, wb, bb_):
    """torch Conv1d weights (C_out, C_in, K) -> im2col layout, A|B fused along
    the output dim: (K*C_in, 2*C_out) bf16 + (1, 2*C_out) f32."""
    c_out, c_in, k = wa.shape
    wa2 = jnp.transpose(wa, (2, 1, 0)).reshape(k * c_in, c_out)
    wb2 = jnp.transpose(wb, (2, 1, 0)).reshape(k * c_in, c_out)
    w = jnp.concatenate([wa2, wb2], axis=1).astype(jnp.bfloat16)
    b = jnp.concatenate([ba, bb_]).reshape(1, 2 * c_out).astype(jnp.float32)
    return w, b


def prepare_params(params):
    """One-time prep (outside jit): bf16 embedding table, fused conv weights,
    transposed + lane-padded head weights."""
    w1c, b1c = _fuse_conv_weights(params["wA1"], params["bA1"],
                                  params["wB1"], params["bB1"])
    w2c, b2c = _fuse_conv_weights(params["wA2"], params["bA2"],
                                  params["wB2"], params["bB2"])
    wl2 = jnp.zeros((HIDDEN, LANE), jnp.bfloat16).at[:, :NUM_CLASS].set(
        params["w2"].T.astype(jnp.bfloat16))
    bl2 = jnp.zeros((1, LANE), jnp.float32).at[:, :NUM_CLASS].set(params["b2"])
    return {
        "emb": params["embedding"].astype(jnp.bfloat16),
        "w1c": w1c, "b1c": b1c,
        "w2c": w2c, "b2c": b2c,
        "wl1": params["w1"].T.astype(jnp.bfloat16),                   # (64, 128)
        "bl1": params["b1"].reshape(1, HIDDEN).astype(jnp.float32),
        "wl2": wl2, "bl2": bl2,
    }


@jax.jit
def gcnn_forward(word_index, prepped):
    """word_index: (B, L) int32 -> logits (B, NUM_CLASS) f32."""
    b, l = word_index.shape
    l1 = _conv_len(l)
    l2 = _conv_len(l1)
    if l < KSIZE or l1 < KSIZE:
        raise ValueError(f"sequence length {l} too short for two stride-7 convs")

    ng1 = l1 + 2                  # stride-groups covering every conv1 window
    l_pad = STRIDE * ng1          # l <= l_pad <= l + 6; padded tail never read
    bb = min(8, b)                # batch block per grid step (amortizes ~0.35us/step)
    b_pad = pl.cdiv(b, bb) * bb

    # Data-dependent embedding gather stays in XLA; table is already bf16.
    # TODO(synk): fuse the gather in-kernel (1.9 MiB bf16 table resident in VMEM,
    # indices via scalar prefetch) to drop the (B, L, C) activation round-trip.
    wi = jnp.pad(word_index, ((0, b_pad - b), (0, l_pad - l)))
    emb = jnp.take(prepped["emb"], wi, axis=0)                # (b_pad, l_pad, 64) bf16
    emb_g = emb.reshape(b_pad, ng1, GCOLS)                    # free reshape: 7 tokens/row

    # Conv2 im2col selector: row j*l2 + t picks h1 row 7t + j (tiny 0/1 matrix).
    r = jnp.arange(KSIZE * l2)
    s2 = jax.nn.one_hot(STRIDE * (r % l2) + r // l2, l1, dtype=jnp.bfloat16)

    out = pl.pallas_call(
        functools.partial(gcnn_fused_kernel, bb=bb, l1=l1, l2=l2),
        out_shape=jax.ShapeDtypeStruct((b_pad, 1, LANE), jnp.float32),
        grid=(b_pad // bb,),
        in_specs=[
            pl.BlockSpec((bb, ng1, GCOLS), lambda i: (i, 0, 0)),          # pipelined
            pl.BlockSpec((KSIZE * EMBED_DIM, 2 * CONV_CH), lambda i: (0, 0)),
            pl.BlockSpec((1, 2 * CONV_CH), lambda i: (0, 0)),
            pl.BlockSpec((KSIZE * l2, l1), lambda i: (0, 0)),
            pl.BlockSpec((KSIZE * CONV_CH, 2 * CONV_CH), lambda i: (0, 0)),
            pl.BlockSpec((1, 2 * CONV_CH), lambda i: (0, 0)),
            pl.BlockSpec((EMBED_DIM, HIDDEN), lambda i: (0, 0)),
            pl.BlockSpec((1, HIDDEN), lambda i: (0, 0)),
            pl.BlockSpec((HIDDEN, LANE), lambda i: (0, 0)),
            pl.BlockSpec((1, LANE), lambda i: (0, 0)),
        ],
        out_specs=pl.BlockSpec((bb, 1, LANE), lambda i: (i, 0, 0)),
        compiler_params=pltpu.CompilerParams(
            dimension_semantics=("parallel",)),
    )(emb_g, prepped["w1c"], prepped["b1c"], s2, prepped["w2c"], prepped["b2c"],
      prepped["wl1"], prepped["bl1"], prepped["wl2"], prepped["bl2"])

    return out[:b, 0, :NUM_CLASS]


# -------------------------- deterministic parameters ------------------------ #

def init_params(key):
    ks = jax.random.split(key, 14)

    def uni(k, shape, bound):
        return jax.random.uniform(k, shape, jnp.float32, -bound, bound)

    b_emb = (6.0 / (VOCAB_SIZE + EMBED_DIM)) ** 0.5          # xavier_uniform
    b_c1 = 1.0 / (EMBED_DIM * KSIZE) ** 0.5                  # torch default scale
    b_c2 = 1.0 / (CONV_CH * KSIZE) ** 0.5
    b_l1 = 1.0 / CONV_CH ** 0.5
    b_l2 = 1.0 / HIDDEN ** 0.5

    return {
        "embedding": uni(ks[0], (VOCAB_SIZE, EMBED_DIM), b_emb),
        "wA1": uni(ks[1], (CONV_CH, EMBED_DIM, KSIZE), b_c1),
        "bA1": uni(ks[2], (CONV_CH,), b_c1),
        "wB1": uni(ks[3], (CONV_CH, EMBED_DIM, KSIZE), b_c1),
        "bB1": uni(ks[4], (CONV_CH,), b_c1),
        "wA2": uni(ks[5], (CONV_CH, CONV_CH, KSIZE), b_c2),
        "bA2": uni(ks[6], (CONV_CH,), b_c2),
        "wB2": uni(ks[7], (CONV_CH, CONV_CH, KSIZE), b_c2),
        "bB2": uni(ks[8], (CONV_CH,), b_c2),
        "w1": uni(ks[9], (HIDDEN, CONV_CH), b_l1),           # torch Linear: (out, in)
        "b1": uni(ks[10], (HIDDEN,), b_l1),
        "w2": uni(ks[11], (NUM_CLASS, HIDDEN), b_l2),
        "b2": uni(ks[12], (NUM_CLASS,), b_l2),
    }


if __name__ == "__main__":
    key = jax.random.PRNGKey(0)
    pkey, dkey = jax.random.split(key)
    params = init_params(pkey)
    prepped = prepare_params(params)

    B, L = 2, 128          # L=128 -> L1 = 17 -> L2 = 1 (both convs valid)
    word_index = jax.random.randint(dkey, (B, L), 0, VOCAB_SIZE, dtype=jnp.int32)

    logits = gcnn_forward(word_index, prepped)
    jax.block_until_ready(logits)
    assert logits.shape == (B, NUM_CLASS) and logits.dtype == jnp.float32
    print("KERNEL_OK")
</pallas_src>

<mosaic_0001>
module attributes {stable_mosaic.version = 11 : i64} {
  func.func @gcnn_fused_kernel(%arg0: i32, %arg1: memref<2x19x448xbf16, #tpu.memory_space<vmem>>, %arg2: memref<960x128xbf16, #tpu.memory_space<vmem>>, %arg3: memref<1x128xf32, #tpu.memory_space<vmem>>, %arg4: memref<15x17xbf16, #tpu.memory_space<vmem>>, %arg5: memref<960x128xbf16, #tpu.memory_space<vmem>>, %arg6: memref<1x128xf32, #tpu.memory_space<vmem>>, %arg7: memref<64x128xbf16, #tpu.memory_space<vmem>>, %arg8: memref<1x128xf32, #tpu.memory_space<vmem>>, %arg9: memref<128x128xbf16, #tpu.memory_space<vmem>>, %arg10: memref<1x128xf32, #tpu.memory_space<vmem>>, %arg11: memref<2x1x128xf32, #tpu.memory_space<vmem>>) attributes {dimension_semantics = [#tpu.dimension_semantics<parallel>], iteration_bounds = array<i64: 1>, scalar_prefetch = 0 : i64, scratch_operands = 0 : i64, tpu.core_type = #tpu.core_type<tc>, window_params = [{transform_indices = @transform_0, window_bounds = array<i64: 2, 19, 448>}, {pipeline_mode = #tpu.pipeline_mode<synchronous>, transform_indices = @transform_1, window_bounds = array<i64: 960, 128>}, {pipeline_mode = #tpu.pipeline_mode<synchronous>, transform_indices = @transform_2, window_bounds = array<i64: 1, 128>}, {pipeline_mode = #tpu.pipeline_mode<synchronous>, transform_indices = @transform_3, window_bounds = array<i64: 15, 17>}, {pipeline_mode = #tpu.pipeline_mode<synchronous>, transform_indices = @transform_4, window_bounds = array<i64: 960, 128>}, {pipeline_mode = #tpu.pipeline_mode<synchronous>, transform_indices = @transform_5, window_bounds = array<i64: 1, 128>}, {pipeline_mode = #tpu.pipeline_mode<synchronous>, transform_indices = @transform_6, window_bounds = array<i64: 64, 128>}, {pipeline_mode = #tpu.pipeline_mode<synchronous>, transform_indices = @transform_7, window_bounds = array<i64: 1, 128>}, {pipeline_mode = #tpu.pipeline_mode<synchronous>, transform_indices = @transform_8, window_bounds = array<i64: 128, 128>}, {pipeline_mode = #tpu.pipeline_mode<synchronous>, transform_indices = @transform_9, window_bounds = array<i64: 1, 128>}, {transform_indices = @transform_10, window_bounds = array<i64: 2, 1, 128>}]} {
    %c0 = arith.constant 0 : index
    %c0_0 = arith.constant 0 : index
    %0 = vector.load %arg2[%c0, %c0_0] : memref<960x128xbf16, #tpu.memory_space<vmem>>, vector<448x128xbf16>
    %c448 = arith.constant 448 : index
    %c0_1 = arith.constant 0 : index
    %1 = vector.load %arg2[%c448, %c0_1] : memref<960x128xbf16, #tpu.memory_space<vmem>>, vector<448x128xbf16>
    %c896 = arith.constant 896 : index
    %c0_2 = arith.constant 0 : index
    %2 = vector.load %arg2[%c896, %c0_2] : memref<960x128xbf16, #tpu.memory_space<vmem>>, vector<64x128xbf16>
    %c0_3 = arith.constant 0 : index
    %c0_4 = arith.constant 0 : index
    %3 = vector.load %arg3[%c0_3, %c0_4] : memref<1x128xf32, #tpu.memory_space<vmem>>, vector<1x128xf32>
    %c0_5 = arith.constant 0 : index
    %c0_6 = arith.constant 0 : index
    %4 = vector.load %arg4[%c0_5, %c0_6] : memref<15x17xbf16, #tpu.memory_space<vmem>>, vector<15x17xbf16>
    %c0_7 = arith.constant 0 : index
    %c0_8 = arith.constant 0 : index
    %5 = vector.load %arg6[%c0_7, %c0_8] : memref<1x128xf32, #tpu.memory_space<vmem>>, vector<1x128xf32>
    %c0_9 = arith.constant 0 : index
    %c0_10 = arith.constant 0 : index
    %6 = vector.load %arg7[%c0_9, %c0_10] : memref<64x128xbf16, #tpu.memory_space<vmem>>, vector<64x128xbf16>
    %c0_11 = arith.constant 0 : index
    %c0_12 = arith.constant 0 : index
    %7 = vector.load %arg8[%c0_11, %c0_12] : memref<1x128xf32, #tpu.memory_space<vmem>>, vector<1x128xf32>
    %c0_13 = arith.constant 0 : index
    %c0_14 = arith.constant 0 : index
    %8 = vector.load %arg9[%c0_13, %c0_14] : memref<128x128xbf16, #tpu.memory_space<vmem>>, vector<128x128xbf16>
    %c0_15 = arith.constant 0 : index
    %c0_16 = arith.constant 0 : index
    %9 = vector.load %arg10[%c0_15, %c0_16] : memref<1x128xf32, #tpu.memory_space<vmem>>, vector<1x128xf32>
    %c0_17 = arith.constant 0 : index
    %c0_18 = arith.constant 0 : index
    %c0_19 = arith.constant 0 : index
    %10 = vector.load %arg1[%c0_17, %c0_18, %c0_19] : memref<2x19x448xbf16, #tpu.memory_space<vmem>>, vector<1x17x448xbf16>
    %11 = vector.shape_cast %10 : vector<1x17x448xbf16> to vector<17x448xbf16>
    %c0_20 = arith.constant 0 : index
    %c1 = arith.constant 1 : index
    %c0_21 = arith.constant 0 : index
    %12 = vector.load %arg1[%c0_20, %c1, %c0_21] : memref<2x19x448xbf16, #tpu.memory_space<vmem>>, vector<1x17x448xbf16>
    %13 = vector.shape_cast %12 : vector<1x17x448xbf16> to vector<17x448xbf16>
    %c0_22 = arith.constant 0 : index
    %c2 = arith.constant 2 : index
    %c0_23 = arith.constant 0 : index
    %14 = vector.load %arg1[%c0_22, %c2, %c0_23] : memref<2x19x448xbf16, #tpu.memory_space<vmem>>, vector<1x17x64xbf16>
    %15 = vector.shape_cast %14 : vector<1x17x64xbf16> to vector<17x64xbf16>
    %cst = arith.constant dense<0.000000e+00> : vector<17x128xf32>
    %16 = tpu.matmul %11, %0, %cst {dimension_numbers = #tpu.dot_dimension_numbers<[1], [0], [0], [1], [0, 0, 1, 1], [], []>} : vector<17x448xbf16>, vector<448x128xbf16>, vector<17x128xf32> -> vector<17x128xf32>
    %cst_24 = arith.constant dense<0.000000e+00> : vector<17x128xf32>
    %17 = tpu.matmul %13, %1, %cst_24 {dimension_numbers = #tpu.dot_dimension_numbers<[1], [0], [0], [1], [0, 0, 1, 1], [], []>} : vector<17x448xbf16>, vector<448x128xbf16>, vector<17x128xf32> -> vector<17x128xf32>
    %18 = arith.addf %16, %17 : vector<17x128xf32>
    %cst_25 = arith.constant dense<0.000000e+00> : vector<17x128xf32>
    %19 = tpu.matmul %15, %2, %cst_25 {dimension_numbers = #tpu.dot_dimension_numbers<[1], [0], [0], [1], [0, 0, 1, 1], [], []>} : vector<17x64xbf16>, vector<64x128xbf16>, vector<17x128xf32> -> vector<17x128xf32>
    %20 = arith.addf %18, %19 : vector<17x128xf32>
    %21 = vector.broadcast %3 : vector<1x128xf32> to vector<17x128xf32>
    %22 = arith.addf %20, %21 : vector<17x128xf32>
    %23 = vector.extract_strided_slice %22 {offsets = [0, 0], sizes = [17, 64], strides = [1, 1]} : vector<17x128xf32> to vector<17x64xf32>
    %24 = vector.extract_strided_slice %22 {offsets = [0, 64], sizes = [17, 64], strides = [1, 1]} : vector<17x128xf32> to vector<17x64xf32>
    %25 = arith.negf %24 : vector<17x64xf32>
    %26 = math.exp %25 : vector<17x64xf32>
    %cst_26 = arith.constant 1.000000e+00 : f32
    %27 = vector.broadcast %cst_26 : f32 to vector<17x64xf32>
    %28 = arith.addf %27, %26 : vector<17x64xf32>
    %29 = arith.divf %27, %28 : vector<17x64xf32>
    %30 = arith.mulf %23, %29 : vector<17x64xf32>
    %31 = arith.truncf %30 : vector<17x64xf32> to vector<17x64xbf16>
    %cst_27 = arith.constant dense<0.000000e+00> : vector<15x64xf32>
    %32 = tpu.matmul %4, %31, %cst_27 {dimension_numbers = #tpu.dot_dimension_numbers<[1], [0], [0], [1], [0, 0, 1, 1], [], []>} : vector<15x17xbf16>, vector<17x64xbf16>, vector<15x64xf32> -> vector<15x64xf32>
    %33 = arith.truncf %32 : vector<15x64xf32> to vector<15x64xbf16>
    %cst_28 = arith.constant 0.000000e+00 : f32
    %34 = vector.broadcast %cst_28 : f32 to vector<1x128xf32>
    %35 = vector.extract_strided_slice %33 {offsets = [0, 0], sizes = [1, 64], strides = [1, 1]} : vector<15x64xbf16> to vector<1x64xbf16>
    %c0_29 = arith.constant 0 : index
    %c0_30 = arith.constant 0 : index
    %36 = vector.load %arg5[%c0_29, %c0_30] : memref<960x128xbf16, #tpu.memory_space<vmem>>, vector<64x128xbf16>
    %cst_31 = arith.constant dense<0.000000e+00> : vector<1x128xf32>
    %37 = tpu.matmul %35, %36, %cst_31 {dimension_numbers = #tpu.dot_dimension_numbers<[1], [0], [0], [1], [0, 0, 1, 1], [], []>} : vector<1x64xbf16>, vector<64x128xbf16>, vector<1x128xf32> -> vector<1x128xf32>
    %38 = arith.addf %34, %37 : vector<1x128xf32>
    %39 = vector.extract_strided_slice %33 {offsets = [1, 0], sizes = [1, 64], strides = [1, 1]} : vector<15x64xbf16> to vector<1x64xbf16>
    %c64 = arith.constant 64 : index
    %c0_32 = arith.constant 0 : index
    %40 = vector.load %arg5[%c64, %c0_32] : memref<960x128xbf16, #tpu.memory_space<vmem>>, vector<64x128xbf16>
    %cst_33 = arith.constant dense<0.000000e+00> : vector<1x128xf32>
    %41 = tpu.matmul %39, %40, %cst_33 {dimension_numbers = #tpu.dot_dimension_numbers<[1], [0], [0], [1], [0, 0, 1, 1], [], []>} : vector<1x64xbf16>, vector<64x128xbf16>, vector<1x128xf32> -> vector<1x128xf32>
    %42 = arith.addf %38, %41 : vector<1x128xf32>
    %43 = vector.extract_strided_slice %33 {offsets = [2, 0], sizes = [1, 64], strides = [1, 1]} : vector<15x64xbf16> to vector<1x64xbf16>
    %c128 = arith.constant 128 : index
    %c0_34 = arith.constant 0 : index
    %44 = vector.load %arg5[%c128, %c0_34] : memref<960x128xbf16, #tpu.memory_space<vmem>>, vector<64x128xbf16>
    %cst_35 = arith.constant dense<0.000000e+00> : vector<1x128xf32>
    %45 = tpu.matmul %43, %44, %cst_35 {dimension_numbers = #tpu.dot_dimension_numbers<[1], [0], [0], [1], [0, 0, 1, 1], [], []>} : vector<1x64xbf16>, vector<64x128xbf16>, vector<1x128xf32> -> vector<1x128xf32>
    %46 = arith.addf %42, %45 : vector<1x128xf32>
    %47 = vector.extract_strided_slice %33 {offsets = [3, 0], sizes = [1, 64], strides = [1, 1]} : vector<15x64xbf16> to vector<1x64xbf16>
    %c192 = arith.constant 192 : index
    %c0_36 = arith.constant 0 : index
    %48 = vector.load %arg5[%c192, %c0_36] : memref<960x128xbf16, #tpu.memory_space<vmem>>, vector<64x128xbf16>
    %cst_37 = arith.constant dense<0.000000e+00> : vector<1x128xf32>
    %49 = tpu.matmul %47, %48, %cst_37 {dimension_numbers = #tpu.dot_dimension_numbers<[1], [0], [0], [1], [0, 0, 1, 1], [], []>} : vector<1x64xbf16>, vector<64x128xbf16>, vector<1x128xf32> -> vector<1x128xf32>
    %50 = arith.addf %46, %49 : vector<1x128xf32>
    %51 = vector.extract_strided_slice %33 {offsets = [4, 0], sizes = [1, 64], strides = [1, 1]} : vector<15x64xbf16> to vector<1x64xbf16>
    %c256 = arith.constant 256 : index
    %c0_38 = arith.constant 0 : index
    %52 = vector.load %arg5[%c256, %c0_38] : memref<960x128xbf16, #tpu.memory_space<vmem>>, vector<64x128xbf16>
    %cst_39 = arith.constant dense<0.000000e+00> : vector<1x128xf32>
    %53 = tpu.matmul %51, %52, %cst_39 {dimension_numbers = #tpu.dot_dimension_numbers<[1], [0], [0], [1], [0, 0, 1, 1], [], []>} : vector<1x64xbf16>, vector<64x128xbf16>, vector<1x128xf32> -> vector<1x128xf32>
    %54 = arith.addf %50, %53 : vector<1x128xf32>
    %55 = vector.extract_strided_slice %33 {offsets = [5, 0], sizes = [1, 64], strides = [1, 1]} : vector<15x64xbf16> to vector<1x64xbf16>
    %c320 = arith.constant 320 : index
    %c0_40 = arith.constant 0 : index
    %56 = vector.load %arg5[%c320, %c0_40] : memref<960x128xbf16, #tpu.memory_space<vmem>>, vector<64x128xbf16>
    %cst_41 = arith.constant dense<0.000000e+00> : vector<1x128xf32>
    %57 = tpu.matmul %55, %56, %cst_41 {dimension_numbers = #tpu.dot_dimension_numbers<[1], [0], [0], [1], [0, 0, 1, 1], [], []>} : vector<1x64xbf16>, vector<64x128xbf16>, vector<1x128xf32> -> vector<1x128xf32>
    %58 = arith.addf %54, %57 : vector<1x128xf32>
    %59 = vector.extract_strided_slice %33 {offsets = [6, 0], sizes = [1, 64], strides = [1, 1]} : vector<15x64xbf16> to vector<1x64xbf16>
    %c384 = arith.constant 384 : index
    %c0_42 = arith.constant 0 : index
    %60 = vector.load %arg5[%c384, %c0_42] : memref<960x128xbf16, #tpu.memory_space<vmem>>, vector<64x128xbf16>
    %cst_43 = arith.constant dense<0.000000e+00> : vector<1x128xf32>
    %61 = tpu.matmul %59, %60, %cst_43 {dimension_numbers = #tpu.dot_dimension_numbers<[1], [0], [0], [1], [0, 0, 1, 1], [], []>} : vector<1x64xbf16>, vector<64x128xbf16>, vector<1x128xf32> -> vector<1x128xf32>
    %62 = arith.addf %58, %61 : vector<1x128xf32>
    %63 = vector.extract_strided_slice %33 {offsets = [7, 0], sizes = [1, 64], strides = [1, 1]} : vector<15x64xbf16> to vector<1x64xbf16>
    %c448_44 = arith.constant 448 : index
    %c0_45 = arith.constant 0 : index
    %64 = vector.load %arg5[%c448_44, %c0_45] : memref<960x128xbf16, #tpu.memory_space<vmem>>, vector<64x128xbf16>
    %cst_46 = arith.constant dense<0.000000e+00> : vector<1x128xf32>
    %65 = tpu.matmul %63, %64, %cst_46 {dimension_numbers = #tpu.dot_dimension_numbers<[1], [0], [0], [1], [0, 0, 1, 1], [], []>} : vector<1x64xbf16>, vector<64x128xbf16>, vector<1x128xf32> -> vector<1x128xf32>
    %66 = arith.addf %62, %65 : vector<1x128xf32>
    %67 = vector.extract_strided_slice %33 {offsets = [8, 0], sizes = [1, 64], strides = [1, 1]} : vector<15x64xbf16> to vector<1x64xbf16>
    %c512 = arith.constant 512 : index
    %c0_47 = arith.constant 0 : index
    %68 = vector.load %arg5[%c512, %c0_47] : memref<960x128xbf16, #tpu.memory_space<vmem>>, vector<64x128xbf16>
    %cst_48 = arith.constant dense<0.000000e+00> : vector<1x128xf32>
    %69 = tpu.matmul %67, %68, %cst_48 {dimension_numbers = #tpu.dot_dimension_numbers<[1], [0], [0], [1], [0, 0, 1, 1], [], []>} : vector<1x64xbf16>, vector<64x128xbf16>, vector<1x128xf32> -> vector<1x128xf32>
    %70 = arith.addf %66, %69 : vector<1x128xf32>
    %71 = vector.extract_strided_slice %33 {offsets = [9, 0], sizes = [1, 64], strides = [1, 1]} : vector<15x64xbf16> to vector<1x64xbf16>
    %c576 = arith.constant 576 : index
    %c0_49 = arith.constant 0 : index
    %72 = vector.load %arg5[%c576, %c0_49] : memref<960x128xbf16, #tpu.memory_space<vmem>>, vector<64x128xbf16>
    %cst_50 = arith.constant dense<0.000000e+00> : vector<1x128xf32>
    %73 = tpu.matmul %71, %72, %cst_50 {dimension_numbers = #tpu.dot_dimension_numbers<[1], [0], [0], [1], [0, 0, 1, 1], [], []>} : vector<1x64xbf16>, vector<64x128xbf16>, vector<1x128xf32> -> vector<1x128xf32>
    %74 = arith.addf %70, %73 : vector<1x128xf32>
    %75 = vector.extract_strided_slice %33 {offsets = [10, 0], sizes = [1, 64], strides = [1, 1]} : vector<15x64xbf16> to vector<1x64xbf16>
    %c640 = arith.constant 640 : index
    %c0_51 = arith.constant 0 : index
    %76 = vector.load %arg5[%c640, %c0_51] : memref<960x128xbf16, #tpu.memory_space<vmem>>, vector<64x128xbf16>
    %cst_52 = arith.constant dense<0.000000e+00> : vector<1x128xf32>
    %77 = tpu.matmul %75, %76, %cst_52 {dimension_numbers = #tpu.dot_dimension_numbers<[1], [0], [0], [1], [0, 0, 1, 1], [], []>} : vector<1x64xbf16>, vector<64x128xbf16>, vector<1x128xf32> -> vector<1x128xf32>
    %78 = arith.addf %74, %77 : vector<1x128xf32>
    %79 = vector.extract_strided_slice %33 {offsets = [11, 0], sizes = [1, 64], strides = [1, 1]} : vector<15x64xbf16> to vector<1x64xbf16>
    %c704 = arith.constant 704 : index
    %c0_53 = arith.constant 0 : index
    %80 = vector.load %arg5[%c704, %c0_53] : memref<960x128xbf16, #tpu.memory_space<vmem>>, vector<64x128xbf16>
    %cst_54 = arith.constant dense<0.000000e+00> : vector<1x128xf32>
    %81 = tpu.matmul %79, %80, %cst_54 {dimension_numbers = #tpu.dot_dimension_numbers<[1], [0], [0], [1], [0, 0, 1, 1], [], []>} : vector<1x64xbf16>, vector<64x128xbf16>, vector<1x128xf32> -> vector<1x128xf32>
    %82 = arith.addf %78, %81 : vector<1x128xf32>
    %83 = vector.extract_strided_slice %33 {offsets = [12, 0], sizes = [1, 64], strides = [1, 1]} : vector<15x64xbf16> to vector<1x64xbf16>
    %c768 = arith.constant 768 : index
    %c0_55 = arith.constant 0 : index
    %84 = vector.load %arg5[%c768, %c0_55] : memref<960x128xbf16, #tpu.memory_space<vmem>>, vector<64x128xbf16>
    %cst_56 = arith.constant dense<0.000000e+00> : vector<1x128xf32>
    %85 = tpu.matmul %83, %84, %cst_56 {dimension_numbers = #tpu.dot_dimension_numbers<[1], [0], [0], [1], [0, 0, 1, 1], [], []>} : vector<1x64xbf16>, vector<64x128xbf16>, vector<1x128xf32> -> vector<1x128xf32>
    %86 = arith.addf %82, %85 : vector<1x128xf32>
    %87 = vector.extract_strided_slice %33 {offsets = [13, 0], sizes = [1, 64], strides = [1, 1]} : vector<15x64xbf16> to vector<1x64xbf16>
    %c832 = arith.constant 832 : index
    %c0_57 = arith.constant 0 : index
    %88 = vector.load %arg5[%c832, %c0_57] : memref<960x128xbf16, #tpu.memory_space<vmem>>, vector<64x128xbf16>
    %cst_58 = arith.constant dense<0.000000e+00> : vector<1x128xf32>
    %89 = tpu.matmul %87, %88, %cst_58 {dimension_numbers = #tpu.dot_dimension_numbers<[1], [0], [0], [1], [0, 0, 1, 1], [], []>} : vector<1x64xbf16>, vector<64x128xbf16>, vector<1x128xf32> -> vector<1x128xf32>
    %90 = arith.addf %86, %89 : vector<1x128xf32>
    %91 = vector.extract_strided_slice %33 {offsets = [14, 0], sizes = [1, 64], strides = [1, 1]} : vector<15x64xbf16> to vector<1x64xbf16>
    %c896_59 = arith.constant 896 : index
    %c0_60 = arith.constant 0 : index
    %92 = vector.load %arg5[%c896_59, %c0_60] : memref<960x128xbf16, #tpu.memory_space<vmem>>, vector<64x128xbf16>
    %cst_61 = arith.constant dense<0.000000e+00> : vector<1x128xf32>
    %93 = tpu.matmul %91, %92, %cst_61 {dimension_numbers = #tpu.dot_dimension_numbers<[1], [0], [0], [1], [0, 0, 1, 1], [], []>} : vector<1x64xbf16>, vector<64x128xbf16>, vector<1x128xf32> -> vector<1x128xf32>
    %94 = arith.addf %90, %93 : vector<1x128xf32>
    %95 = arith.addf %94, %5 : vector<1x128xf32>
    %96 = vector.extract_strided_slice %95 {offsets = [0, 0], sizes = [1, 64], strides = [1, 1]} : vector<1x128xf32> to vector<1x64xf32>
    %97 = vector.extract_strided_slice %95 {offsets = [0, 64], sizes = [1, 64], strides = [1, 1]} : vector<1x128xf32> to vector<1x64xf32>
    %98 = arith.negf %97 : vector<1x64xf32>
    %99 = math.exp %98 : vector<1x64xf32>
    %cst_62 = arith.constant 1.000000e+00 : f32
    %100 = vector.broadcast %cst_62 : f32 to vector<1x64xf32>
    %101 = arith.addf %100, %99 : vector<1x64xf32>
    %102 = arith.divf %100, %101 : vector<1x64xf32>
    %103 = arith.mulf %96, %102 : vector<1x64xf32>
    %cst_63 = arith.constant dense<0.000000e+00> : vector<64xf32>
    %104 = vector.multi_reduction <add>, %103, %cst_63 [0] : vector<1x64xf32> to vector<64xf32>
    %105 = vector.shape_cast %104 : vector<64xf32> to vector<1x64xf32>
    %cst_64 = arith.constant 1.000000e+00 : f32
    %106 = vector.broadcast %cst_64 : f32 to vector<1x64xf32>
    %107 = arith.mulf %105, %106 : vector<1x64xf32>
    %108 = arith.truncf %107 : vector<1x64xf32> to vector<1x64xbf16>
    %cst_65 = arith.constant dense<0.000000e+00> : vector<1x128xf32>
    %109 = tpu.matmul %108, %6, %cst_65 {dimension_numbers = #tpu.dot_dimension_numbers<[1], [0], [0], [1], [0, 0, 1, 1], [], []>} : vector<1x64xbf16>, vector<64x128xbf16>, vector<1x128xf32> -> vector<1x128xf32>
    %110 = arith.addf %109, %7 : vector<1x128xf32>
    %111 = arith.truncf %110 : vector<1x128xf32> to vector<1x128xbf16>
    %cst_66 = arith.constant dense<0.000000e+00> : vector<1x128xf32>
    %112 = tpu.matmul %111, %8, %cst_66 {dimension_numbers = #tpu.dot_dimension_numbers<[1], [0], [0], [1], [0, 0, 1, 1], [], []>} : vector<1x128xbf16>, vector<128x128xbf16>, vector<1x128xf32> -> vector<1x128xf32>
    %113 = arith.addf %112, %9 : vector<1x128xf32>
    %c0_67 = arith.constant 0 : index
    %c0_68 = arith.constant 0 : index
    %c0_69 = arith.constant 0 : index
    %114 = vector.load %arg11[%c0_67, %c0_68, %c0_69] : memref<2x1x128xf32, #tpu.memory_space<vmem>>, vector<1x1x128xf32>
    %115 = vector.shape_cast %114 : vector<1x1x128xf32> to vector<1x128xf32>
    %116 = vector.shape_cast %113 : vector<1x128xf32> to vector<1x1x128xf32>
    tpu.vector_store %arg11[%c0_67, %c0_68, %c0_69], %116 {strides = array<i32>} : memref<2x1x128xf32, #tpu.memory_space<vmem>>, vector<1x1x128xf32>,
    %c1_70 = arith.constant 1 : index
    %c0_71 = arith.constant 0 : index
    %c0_72 = arith.constant 0 : index
    %117 = vector.load %arg1[%c1_70, %c0_71, %c0_72] : memref<2x19x448xbf16, #tpu.memory_space<vmem>>, vector<1x17x448xbf16>
    %118 = vector.shape_cast %117 : vector<1x17x448xbf16> to vector<17x448xbf16>
    %c1_73 = arith.constant 1 : index
    %c1_74 = arith.constant 1 : index
    %c0_75 = arith.constant 0 : index
    %119 = vector.load %arg1[%c1_73, %c1_74, %c0_75] : memref<2x19x448xbf16, #tpu.memory_space<vmem>>, vector<1x17x448xbf16>
    %120 = vector.shape_cast %119 : vector<1x17x448xbf16> to vector<17x448xbf16>
    %c1_76 = arith.constant 1 : index
    %c2_77 = arith.constant 2 : index
    %c0_78 = arith.constant 0 : index
    %121 = vector.load %arg1[%c1_76, %c2_77, %c0_78] : memref<2x19x448xbf16, #tpu.memory_space<vmem>>, vector<1x17x64xbf16>
    %122 = vector.shape_cast %121 : vector<1x17x64xbf16> to vector<17x64xbf16>
    %cst_79 = arith.constant dense<0.000000e+00> : vector<17x128xf32>
    %123 = tpu.matmul %118, %0, %cst_79 {dimension_numbers = #tpu.dot_dimension_numbers<[1], [0], [0], [1], [0, 0, 1, 1], [], []>} : vector<17x448xbf16>, vector<448x128xbf16>, vector<17x128xf32> -> vector<17x128xf32>
    %cst_80 = arith.constant dense<0.000000e+00> : vector<17x128xf32>
    %124 = tpu.matmul %120, %1, %cst_80 {dimension_numbers = #tpu.dot_dimension_numbers<[1], [0], [0], [1], [0, 0, 1, 1], [], []>} : vector<17x448xbf16>, vector<448x128xbf16>, vector<17x128xf32> -> vector<17x128xf32>
    %125 = arith.addf %123, %124 : vector<17x128xf32>
    %cst_81 = arith.constant dense<0.000000e+00> : vector<17x128xf32>
    %126 = tpu.matmul %122, %2, %cst_81 {dimension_numbers = #tpu.dot_dimension_numbers<[1], [0], [0], [1], [0, 0, 1, 1], [], []>} : vector<17x64xbf16>, vector<64x128xbf16>, vector<17x128xf32> -> vector<17x128xf32>
    %127 = arith.addf %125, %126 : vector<17x128xf32>
    %128 = vector.broadcast %3 : vector<1x128xf32> to vector<17x128xf32>
    %129 = arith.addf %127, %128 : vector<17x128xf32>
    %130 = vector.extract_strided_slice %129 {offsets = [0, 0], sizes = [17, 64], strides = [1, 1]} : vector<17x128xf32> to vector<17x64xf32>
    %131 = vector.extract_strided_slice %129 {offsets = [0, 64], sizes = [17, 64], strides = [1, 1]} : vector<17x128xf32> to vector<17x64xf32>
    %132 = arith.negf %131 : vector<17x64xf32>
    %133 = math.exp %132 : vector<17x64xf32>
    %cst_82 = arith.constant 1.000000e+00 : f32
    %134 = vector.broadcast %cst_82 : f32 to vector<17x64xf32>
    %135 = arith.addf %134, %133 : vector<17x64xf32>
    %136 = arith.divf %134, %135 : vector<17x64xf32>
    %137 = arith.mulf %130, %136 : vector<17x64xf32>
    %138 = arith.truncf %137 : vector<17x64xf32> to vector<17x64xbf16>
    %cst_83 = arith.constant dense<0.000000e+00> : vector<15x64xf32>
    %139 = tpu.matmul %4, %138, %cst_83 {dimension_numbers = #tpu.dot_dimension_numbers<[1], [0], [0], [1], [0, 0, 1, 1], [], []>} : vector<15x17xbf16>, vector<17x64xbf16>, vector<15x64xf32> -> vector<15x64xf32>
    %140 = arith.truncf %139 : vector<15x64xf32> to vector<15x64xbf16>
    %cst_84 = arith.constant 0.000000e+00 : f32
    %141 = vector.broadcast %cst_84 : f32 to vector<1x128xf32>
    %142 = vector.extract_strided_slice %140 {offsets = [0, 0], sizes = [1, 64], strides = [1, 1]} : vector<15x64xbf16> to vector<1x64xbf16>
    %c0_85 = arith.constant 0 : index
    %c0_86 = arith.constant 0 : index
    %143 = vector.load %arg5[%c0_85, %c0_86] : memref<960x128xbf16, #tpu.memory_space<vmem>>, vector<64x128xbf16>
    %cst_87 = arith.constant dense<0.000000e+00> : vector<1x128xf32>
    %144 = tpu.matmul %142, %143, %cst_87 {dimension_numbers = #tpu.dot_dimension_numbers<[1], [0], [0], [1], [0, 0, 1, 1], [], []>} : vector<1x64xbf16>, vector<64x128xbf16>, vector<1x128xf32> -> vector<1x128xf32>
    %145 = arith.addf %141, %144 : vector<1x128xf32>
    %146 = vector.extract_strided_slice %140 {offsets = [1, 0], sizes = [1, 64], strides = [1, 1]} : vector<15x64xbf16> to vector<1x64xbf16>
    %c64_88 = arith.constant 64 : index
    %c0_89 = arith.constant 0 : index
    %147 = vector.load %arg5[%c64_88, %c0_89] : memref<960x128xbf16, #tpu.memory_space<vmem>>, vector<64x128xbf16>
    %cst_90 = arith.constant dense<0.000000e+00> : vector<1x128xf32>
    %148 = tpu.matmul %146, %147, %cst_90 {dimension_numbers = #tpu.dot_dimension_numbers<[1], [0], [0], [1], [0, 0, 1, 1], [], []>} : vector<1x64xbf16>, vector<64x128xbf16>, vector<1x128xf32> -> vector<1x128xf32>
    %149 = arith.addf %145, %148 : vector<1x128xf32>
    %150 = vector.extract_strided_slice %140 {offsets = [2, 0], sizes = [1, 64], strides = [1, 1]} : vector<15x64xbf16> to vector<1x64xbf16>
    %c128_91 = arith.constant 128 : index
    %c0_92 = arith.constant 0 : index
    %151 = vector.load %arg5[%c128_91, %c0_92] : memref<960x128xbf16, #tpu.memory_space<vmem>>, vector<64x128xbf16>
    %cst_93 = arith.constant dense<0.000000e+00> : vector<1x128xf32>
    %152 = tpu.matmul %150, %151, %cst_93 {dimension_numbers = #tpu.dot_dimension_numbers<[1], [0], [0], [1], [0, 0, 1, 1], [], []>} : vector<1x64xbf16>, vector<64x128xbf16>, vector<1x128xf32> -> vector<1x128xf32>
    %153 = arith.addf %149, %152 : vector<1x128xf32>
    %154 = vector.extract_strided_slice %140 {offsets = [3, 0], sizes = [1, 64], strides = [1, 1]} : vector<15x64xbf16> to vector<1x64xbf16>
    %c192_94 = arith.constant 192 : index
    %c0_95 = arith.constant 0 : index
    %155 = vector.load %arg5[%c192_94, %c0_95] : memref<960x128xbf16, #tpu.memory_space<vmem>>, vector<64x128xbf16>
    %cst_96 = arith.constant dense<0.000000e+00> : vector<1x128xf32>
    %156 = tpu.matmul %154, %155, %cst_96 {dimension_numbers = #tpu.dot_dimension_numbers<[1], [0], [0], [1], [0, 0, 1, 1], [], []>} : vector<1x64xbf16>, vector<64x128xbf16>, vector<1x128xf32> -> vector<1x128xf32>
    %157 = arith.addf %153, %156 : vector<1x128xf32>
    %158 = vector.extract_strided_slice %140 {offsets = [4, 0], sizes = [1, 64], strides = [1, 1]} : vector<15x64xbf16> to vector<1x64xbf16>
    %c256_97 = arith.constant 256 : index
    %c0_98 = arith.constant 0 : index
    %159 = vector.load %arg5[%c256_97, %c0_98] : memref<960x128xbf16, #tpu.memory_space<vmem>>, vector<64x128xbf16>
    %cst_99 = arith.constant dense<0.000000e+00> : vector<1x128xf32>
    %160 = tpu.matmul %158, %159, %cst_99 {dimension_numbers = #tpu.dot_dimension_numbers<[1], [0], [0], [1], [0, 0, 1, 1], [], []>} : vector<1x64xbf16>, vector<64x128xbf16>, vector<1x128xf32> -> vector<1x128xf32>
    %161 = arith.addf %157, %160 : vector<1x128xf32>
    %162 = vector.extract_strided_slice %140 {offsets = [5, 0], sizes = [1, 64], strides = [1, 1]} : vector<15x64xbf16> to vector<1x64xbf16>
    %c320_100 = arith.constant 320 : index
    %c0_101 = arith.constant 0 : index
    %163 = vector.load %arg5[%c320_100, %c0_101] : memref<960x128xbf16, #tpu.memory_space<vmem>>, vector<64x128xbf16>
    %cst_102 = arith.constant dense<0.000000e+00> : vector<1x128xf32>
    %164 = tpu.matmul %162, %163, %cst_102 {dimension_numbers = #tpu.dot_dimension_numbers<[1], [0], [0], [1], [0, 0, 1, 1], [], []>} : vector<1x64xbf16>, vector<64x128xbf16>, vector<1x128xf32> -> vector<1x128xf32>
    %165 = arith.addf %161, %164 : vector<1x128xf32>
    %166 = vector.extract_strided_slice %140 {offsets = [6, 0], sizes = [1, 64], strides = [1, 1]} : vector<15x64xbf16> to vector<1x64xbf16>
    %c384_103 = arith.constant 384 : index
    %c0_104 = arith.constant 0 : index
    %167 = vector.load %arg5[%c384_103, %c0_104] : memref<960x128xbf16, #tpu.memory_space<vmem>>, vector<64x128xbf16>
    %cst_105 = arith.constant dense<0.000000e+00> : vector<1x128xf32>
    %168 = tpu.matmul %166, %167, %cst_105 {dimension_numbers = #tpu.dot_dimension_numbers<[1], [0], [0], [1], [0, 0, 1, 1], [], []>} : vector<1x64xbf16>, vector<64x128xbf16>, vector<1x128xf32> -> vector<1x128xf32>
    %169 = arith.addf %165, %168 : vector<1x128xf32>
    %170 = vector.extract_strided_slice %140 {offsets = [7, 0], sizes = [1, 64], strides = [1, 1]} : vector<15x64xbf16> to vector<1x64xbf16>
    %c448_106 = arith.constant 448 : index
    %c0_107 = arith.constant 0 : index
    %171 = vector.load %arg5[%c448_106, %c0_107] : memref<960x128xbf16, #tpu.memory_space<vmem>>, vector<64x128xbf16>
    %cst_108 = arith.constant dense<0.000000e+00> : vector<1x128xf32>
    %172 = tpu.matmul %170, %171, %cst_108 {dimension_numbers = #tpu.dot_dimension_numbers<[1], [0], [0], [1], [0, 0, 1, 1], [], []>} : vector<1x64xbf16>, vector<64x128xbf16>, vector<1x128xf32> -> vector<1x128xf32>
    %173 = arith.addf %169, %172 : vector<1x128xf32>
    %174 = vector.extract_strided_slice %140 {offsets = [8, 0], sizes = [1, 64], strides = [1, 1]} : vector<15x64xbf16> to vector<1x64xbf16>
    %c512_109 = arith.constant 512 : index
    %c0_110 = arith.constant 0 : index
    %175 = vector.load %arg5[%c512_109, %c0_110] : memref<960x128xbf16, #tpu.memory_space<vmem>>, vector<64x128xbf16>
    %cst_111 = arith.constant dense<0.000000e+00> : vector<1x128xf32>
    %176 = tpu.matmul %174, %175, %cst_111 {dimension_numbers = #tpu.dot_dimension_numbers<[1], [0], [0], [1], [0, 0, 1, 1], [], []>} : vector<1x64xbf16>, vector<64x128xbf16>, vector<1x128xf32> -> vector<1x128xf32>
    %177 = arith.addf %173, %176 : vector<1x128xf32>
    %178 = vector.extract_strided_slice %140 {offsets = [9, 0], sizes = [1, 64], strides = [1, 1]} : vector<15x64xbf16> to vector<1x64xbf16>
    %c576_112 = arith.constant 576 : index
    %c0_113 = arith.constant 0 : index
    %179 = vector.load %arg5[%c576_112, %c0_113] : memref<960x128xbf16, #tpu.memory_space<vmem>>, vector<64x128xbf16>
    %cst_114 = arith.constant dense<0.000000e+00> : vector<1x128xf32>
    %180 = tpu.matmul %178, %179, %cst_114 {dimension_numbers = #tpu.dot_dimension_numbers<[1], [0], [0], [1], [0, 0, 1, 1], [], []>} : vector<1x64xbf16>, vector<64x128xbf16>, vector<1x128xf32> -> vector<1x128xf32>
    %181 = arith.addf %177, %180 : vector<1x128xf32>
    %182 = vector.extract_strided_slice %140 {offsets = [10, 0], sizes = [1, 64], strides = [1, 1]} : vector<15x64xbf16> to vector<1x64xbf16>
    %c640_115 = arith.constant 640 : index
    %c0_116 = arith.constant 0 : index
    %183 = vector.load %arg5[%c640_115, %c0_116] : memref<960x128xbf16, #tpu.memory_space<vmem>>, vector<64x128xbf16>
    %cst_117 = arith.constant dense<0.000000e+00> : vector<1x128xf32>
    %184 = tpu.matmul %182, %183, %cst_117 {dimension_numbers = #tpu.dot_dimension_numbers<[1], [0], [0], [1], [0, 0, 1, 1], [], []>} : vector<1x64xbf16>, vector<64x128xbf16>, vector<1x128xf32> -> vector<1x128xf32>
    %185 = arith.addf %181, %184 : vector<1x128xf32>
    %186 = vector.extract_strided_slice %140 {offsets = [11, 0], sizes = [1, 64], strides = [1, 1]} : vector<15x64xbf16> to vector<1x64xbf16>
    %c704_118 = arith.constant 704 : index
    %c0_119 = arith.constant 0 : index
    %187 = vector.load %arg5[%c704_118, %c0_119] : memref<960x128xbf16, #tpu.memory_space<vmem>>, vector<64x128xbf16>
    %cst_120 = arith.constant dense<0.000000e+00> : vector<1x128xf32>
    %188 = tpu.matmul %186, %187, %cst_120 {dimension_numbers = #tpu.dot_dimension_numbers<[1], [0], [0], [1], [0, 0, 1, 1], [], []>} : vector<1x64xbf16>, vector<64x128xbf16>, vector<1x128xf32> -> vector<1x128xf32>
    %189 = arith.addf %185, %188 : vector<1x128xf32>
    %190 = vector.extract_strided_slice %140 {offsets = [12, 0], sizes = [1, 64], strides = [1, 1]} : vector<15x64xbf16> to vector<1x64xbf16>
    %c768_121 = arith.constant 768 : index
    %c0_122 = arith.constant 0 : index
    %191 = vector.load %arg5[%c768_121, %c0_122] : memref<960x128xbf16, #tpu.memory_space<vmem>>, vector<64x128xbf16>
    %cst_123 = arith.constant dense<0.000000e+00> : vector<1x128xf32>
    %192 = tpu.matmul %190, %191, %cst_123 {dimension_numbers = #tpu.dot_dimension_numbers<[1], [0], [0], [1], [0, 0, 1, 1], [], []>} : vector<1x64xbf16>, vector<64x128xbf16>, vector<1x128xf32> -> vector<1x128xf32>
    %193 = arith.addf %189, %192 : vector<1x128xf32>
    %194 = vector.extract_strided_slice %140 {offsets = [13, 0], sizes = [1, 64], strides = [1, 1]} : vector<15x64xbf16> to vector<1x64xbf16>
    %c832_124 = arith.constant 832 : index
    %c0_125 = arith.constant 0 : index
    %195 = vector.load %arg5[%c832_124, %c0_125] : memref<960x128xbf16, #tpu.memory_space<vmem>>, vector<64x128xbf16>
    %cst_126 = arith.constant dense<0.000000e+00> : vector<1x128xf32>
    %196 = tpu.matmul %194, %195, %cst_126 {dimension_numbers = #tpu.dot_dimension_numbers<[1], [0], [0], [1], [0, 0, 1, 1], [], []>} : vector<1x64xbf16>, vector<64x128xbf16>, vector<1x128xf32> -> vector<1x128xf32>
    %197 = arith.addf %193, %196 : vector<1x128xf32>
    %198 = vector.extract_strided_slice %140 {offsets = [14, 0], sizes = [1, 64], strides = [1, 1]} : vector<15x64xbf16> to vector<1x64xbf16>
    %c896_127 = arith.constant 896 : index
    %c0_128 = arith.constant 0 : index
    %199 = vector.load %arg5[%c896_127, %c0_128] : memref<960x128xbf16, #tpu.memory_space<vmem>>, vector<64x128xbf16>
    %cst_129 = arith.constant dense<0.000000e+00> : vector<1x128xf32>
    %200 = tpu.matmul %198, %199, %cst_129 {dimension_numbers = #tpu.dot_dimension_numbers<[1], [0], [0], [1], [0, 0, 1, 1], [], []>} : vector<1x64xbf16>, vector<64x128xbf16>, vector<1x128xf32> -> vector<1x128xf32>
    %201 = arith.addf %197, %200 : vector<1x128xf32>
    %202 = arith.addf %201, %5 : vector<1x128xf32>
    %203 = vector.extract_strided_slice %202 {offsets = [0, 0], sizes = [1, 64], strides = [1, 1]} : vector<1x128xf32> to vector<1x64xf32>
    %204 = vector.extract_strided_slice %202 {offsets = [0, 64], sizes = [1, 64], strides = [1, 1]} : vector<1x128xf32> to vector<1x64xf32>
    %205 = arith.negf %204 : vector<1x64xf32>
    %206 = math.exp %205 : vector<1x64xf32>
    %cst_130 = arith.constant 1.000000e+00 : f32
    %207 = vector.broadcast %cst_130 : f32 to vector<1x64xf32>
    %208 = arith.addf %207, %206 : vector<1x64xf32>
    %209 = arith.divf %207, %208 : vector<1x64xf32>
    %210 = arith.mulf %203, %209 : vector<1x64xf32>
    %cst_131 = arith.constant dense<0.000000e+00> : vector<64xf32>
    %211 = vector.multi_reduction <add>, %210, %cst_131 [0] : vector<1x64xf32> to vector<64xf32>
    %212 = vector.shape_cast %211 : vector<64xf32> to vector<1x64xf32>
    %cst_132 = arith.constant 1.000000e+00 : f32
    %213 = vector.broadcast %cst_132 : f32 to vector<1x64xf32>
    %214 = arith.mulf %212, %213 : vector<1x64xf32>
    %215 = arith.truncf %214 : vector<1x64xf32> to vector<1x64xbf16>
    %cst_133 = arith.constant dense<0.000000e+00> : vector<1x128xf32>
    %216 = tpu.matmul %215, %6, %cst_133 {dimension_numbers = #tpu.dot_dimension_numbers<[1], [0], [0], [1], [0, 0, 1, 1], [], []>} : vector<1x64xbf16>, vector<64x128xbf16>, vector<1x128xf32> -> vector<1x128xf32>
    %217 = arith.addf %216, %7 : vector<1x128xf32>
    %218 = arith.truncf %217 : vector<1x128xf32> to vector<1x128xbf16>
    %cst_134 = arith.constant dense<0.000000e+00> : vector<1x128xf32>
    %219 = tpu.matmul %218, %8, %cst_134 {dimension_numbers = #tpu.dot_dimension_numbers<[1], [0], [0], [1], [0, 0, 1, 1], [], []>} : vector<1x128xbf16>, vector<128x128xbf16>, vector<1x128xf32> -> vector<1x128xf32>
    %220 = arith.addf %219, %9 : vector<1x128xf32>
    %c1_135 = arith.constant 1 : index
    %c0_136 = arith.constant 0 : index
    %c0_137 = arith.constant 0 : index
    %221 = vector.load %arg11[%c1_135, %c0_136, %c0_137] : memref<2x1x128xf32, #tpu.memory_space<vmem>>, vector<1x1x128xf32>
    %222 = vector.shape_cast %221 : vector<1x1x128xf32> to vector<1x128xf32>
    %223 = vector.shape_cast %220 : vector<1x128xf32> to vector<1x1x128xf32>
    tpu.vector_store %arg11[%c1_135, %c0_136, %c0_137], %223 {strides = array<i32>} : memref<2x1x128xf32, #tpu.memory_space<vmem>>, vector<1x1x128xf32>,
    return
  }
  func.func @transform_0(%arg0: i32) -> (i32, i32, i32) {
    %c0_i32 = arith.constant 0 : i32
    %c0_i32_0 = arith.constant 0 : i32
    %c0_i32_1 = arith.constant 0 : i32
    return %arg0, %c0_i32, %c0_i32_0 : i32, i32, i32
  }
  func.func @transform_1(%arg0: i32) -> (i32, i32) {
    %c0_i32 = arith.constant 0 : i32
    %c0_i32_0 = arith.constant 0 : i32
    %c0_i32_1 = arith.constant 0 : i32
    return %c0_i32, %c0_i32_0 : i32, i32
  }
  func.func @transform_2(%arg0: i32) -> (i32, i32) {
    %c0_i32 = arith.constant 0 : i32
    %c0_i32_0 = arith.constant 0 : i32
    %c0_i32_1 = arith.constant 0 : i32
    return %c0_i32, %c0_i32_0 : i32, i32
  }
  func.func @transform_3(%arg0: i32) -> (i32, i32) {
    %c0_i32 = arith.constant 0 : i32
    %c0_i32_0 = arith.constant 0 : i32
    %c0_i32_1 = arith.constant 0 : i32
    return %c0_i32, %c0_i32_0 : i32, i32
  }
  func.func @transform_4(%arg0: i32) -> (i32, i32) {
    %c0_i32 = arith.constant 0 : i32
    %c0_i32_0 = arith.constant 0 : i32
    %c0_i32_1 = arith.constant 0 : i32
    return %c0_i32, %c0_i32_0 : i32, i32
  }
  func.func @transform_5(%arg0: i32) -> (i32, i32) {
    %c0_i32 = arith.constant 0 : i32
    %c0_i32_0 = arith.constant 0 : i32
    %c0_i32_1 = arith.constant 0 : i32
    return %c0_i32, %c0_i32_0 : i32, i32
  }
  func.func @transform_6(%arg0: i32) -> (i32, i32) {
    %c0_i32 = arith.constant 0 : i32
    %c0_i32_0 = arith.constant 0 : i32
    %c0_i32_1 = arith.constant 0 : i32
    return %c0_i32, %c0_i32_0 : i32, i32
  }
  func.func @transform_7(%arg0: i32) -> (i32, i32) {
    %c0_i32 = arith.constant 0 : i32
    %c0_i32_0 = arith.constant 0 : i32
    %c0_i32_1 = arith.constant 0 : i32
    return %c0_i32, %c0_i32_0 : i32, i32
  }
  func.func @transform_8(%arg0: i32) -> (i32, i32) {
    %c0_i32 = arith.constant 0 : i32
    %c0_i32_0 = arith.constant 0 : i32
    %c0_i32_1 = arith.constant 0 : i32
    return %c0_i32, %c0_i32_0 : i32, i32
  }
  func.func @transform_9(%arg0: i32) -> (i32, i32) {
    %c0_i32 = arith.constant 0 : i32
    %c0_i32_0 = arith.constant 0 : i32
    %c0_i32_1 = arith.constant 0 : i32
    return %c0_i32, %c0_i32_0 : i32, i32
  }
  func.func @transform_10(%arg0: i32) -> (i32, i32, i32) {
    %c0_i32 = arith.constant 0 : i32
    %c0_i32_0 = arith.constant 0 : i32
    %c0_i32_1 = arith.constant 0 : i32
    return %arg0, %c0_i32, %c0_i32_0 : i32, i32, i32
  }
}

</mosaic_0001>

<bundles_post_ra>
// kernel: gcnn_forward.1
= control target key start
LH: loop header
LB: loop body
LE: loop exit
PB: predicated region body
PF: predicated region fallthrough
CT: control target
= control target key end

     0   :  { %v5491_v1 = vmov 0   ;;  %vm222_vm0 = vsmask.f32 7424  ;;  %vm453_vm1 = vcmask 523264   ;;  %vm838_vm2 = vcmask 1046528   ;;  %s6869_s0 = inlined_call_operand.vmem [shape: bf16[2,19,448], index: 0, kind: input, shape index: {}]   ;;  %s6870_s1 = inlined_call_operand.vmem [shape: bf16[960,128], index: 1, kind: input, shape index: {}]   ;;  %s6871_s2 = inlined_call_operand.vmem [shape: f32[1,128], index: 2, kind: input, shape index: {}]   ;;  %s6872_s3 = inlined_call_operand.vmem [shape: bf16[15,17], index: 3, kind: input, shape index: {}]   ;;  %s6873_s4 = inlined_call_operand.vmem [shape: bf16[960,128], index: 4, kind: input, shape index: {}]   ;;  %s6874_s5 = inlined_call_operand.vmem [shape: f32[1,128], index: 5, kind: input, shape index: {}]   ;;  %s6875_s6 = inlined_call_operand.vmem [shape: bf16[64,128], index: 6, kind: input, shape index: {}]   ;;  %s6876_s7 = inlined_call_operand.vmem [shape: f32[1,128], index: 7, kind: input, shape index: {}]   ;;  %s6877_s8 = inlined_call_operand.vmem [shape: bf16[128,128], index: 8, kind: input, shape index: {}]   ;;  %s6878_s9 = inlined_call_operand.vmem [shape: f32[1,128], index: 9, kind: input, shape index: {}]   ;;  %s6879_s10 = inlined_call_operand.hbm [shape: f32[2,1,128], index: 10, kind: output, shape index: {}]  }
   0x1   :  { %v5148_v0 = vld [vmem:[%s6870_s1 + $0x120] sm:$0xff]   ;;  %508 = vmatprep.subr.bf16.mxu1 %v5491_v1  ;;  %v5151_v4 = vld [vmem:[%s6870_s1 + $0x128] sm:$0xff]   ;;  %v5154_v7 = vld [vmem:[%s6870_s1 + $0x130] sm:$0xff]  }
   0x2   :  { %v5149_v2 = vld [vmem:[%s6870_s1 + $0x160] sm:$0xff]   ;;  %4353 = vmatprep.subr.bf16.mxu0 %v5148_v0  ;;  %v5152_v5 = vld [vmem:[%s6870_s1 + $0x168] sm:$0xff]   ;;  %v5155_v8 = vld [vmem:[%s6870_s1 + $0x170] sm:$0xff]  }
   0x3   :  { %v5150_v3 = vld [vmem:[%s6870_s1 + $0xe0] sm:$0xff]   ;;  %509 = vmatpush1.bf16.msra.mxu1 %v5149_v2  ;;  %v5153_v6 = vld [vmem:[%s6870_s1 + $0xe8] sm:$0xff]   ;;  %v5156_v9 = vld [vmem:[%s6870_s1 + $0xf0] sm:$0xff]  }
   0x4   :  { %4354 = vmatpush3.bf16.msra.mxu0 %v5150_v3  ;;  %510 = vmatprep.subr.bf16.mxu1 %v5491_v1  ;;  %v5157_v10 = vld [vmem:[%s6870_s1 + $0x138] sm:$0xff]   ;;  %v5160_v13 = vld [vmem:[%s6870_s1 + $0x140] sm:$0xff]   ;;  %v5163_v16 = vld [vmem:[%s6870_s1 + $0x148] sm:$0xff]  }
   0x5   :  { %4355 = vmatprep.subr.bf16.mxu0 %v5151_v4  ;;  %v5158_v11 = vld [vmem:[%s6870_s1 + $0x178] sm:$0xff]   ;;  %v5161_v14 = vld [vmem:[%s6870_s1 + $0x180] sm:$0xff]   ;;  %v5164_v17 = vld [vmem:[%s6870_s1 + $0x188] sm:$0xff]  }
   0x6   :  { %v5159_v12 = vld [vmem:[%s6870_s1 + $0xf8] sm:$0xff]   ;;  %v5162_v15 = vld [vmem:[%s6870_s1 + $0x100] sm:$0xff]   ;;  %v5165_v18 = vld [vmem:[%s6870_s1 + $0x108] sm:$0xff]  }
   0x7   :  { %511 = vmatpush1.bf16.msra.mxu1 %v5152_v5  ;;  %v5166_v19 = vld [vmem:[%s6870_s1 + $0x150] sm:$0xff]   ;;  %v5169_v22 = vld [vmem:[%s6870_s1 + $0x158] sm:$0xff]   ;;  %v191_v23 = vld [vmem:[%s6869_s0 + $0x20] sm:$0x11] }
   0x8   :  { %4356 = vmatpush3.bf16.msra.mxu0 %v5153_v6  ;;  %512 = vmatprep.subr.bf16.mxu1 %v5491_v1  ;;  %v5167_v20 = vld [vmem:[%s6870_s1 + $0x190] sm:$0xff]   ;;  %v5170_v24 = vld [vmem:[%s6870_s1 + $0x198] sm:$0xff]   ;;  %v5637_v26 = vcombine.high %v191_v23, %v191_v23  ;;  %v5639_v27 = vcombine.low %v191_v23, %v191_v23  ;;  %v5176_v33 = vld [vmem:[%s6870_s1 + $0x40] sm:$0xff]  }
   0x9   :  { %4357 = vmatprep.subr.bf16.mxu0 %v5154_v7  ;;  %v5168_v21 = vld [vmem:[%s6870_s1 + $0x110] sm:$0xff]   ;;  %v5171_v28 = vld [vmem:[%s6870_s1 + $0x118] sm:$0xff]   ;;  %v5175_v39 = vld [vmem:[%s6870_s1 + $0x1a0] sm:$0xff]  }
   0xa   :  { %v5635_v25 = vld [vmem:[%s6869_s0 + $0x4] ss:$16 sps:$4 sm:$0xff]   ;;  %v243_v31 = vshll.u32 %v5637_v26, 16  ;;  %v5650_v32 = vld [vmem:[%s6869_s0] ss:$16 sps:$4 sm:$0xff]   ;;  %v231_v34 = vshll.u32 %v5639_v27, 16 }
   0xb   :  { %513 = vmatpush1.bf16.msra.mxu1 %v5155_v8  ;;  %v236_v29 = vshrl.u32 %v5635_v25, 16  ;;  %v238_v30 = vshll.u32 %v5635_v25, 16  ;;  %v224_v37 = vshrl.u32 %v5650_v32, 16  ;;  %v226_v38 = vshll.u32 %v5650_v32, 16  ;;  %v5179_v45 = vld [vmem:[%s6870_s1] sm:$0xff]   ;;  %v5181_v47 = vld [vmem:[%s6870_s1 + $0x48] sm:$0xff]  }
   0xc   :  { %4358 = vmatpush3.bf16.msra.mxu0 %v5156_v9  ;;  %514 = vmatprep.subr.bf16.mxu1 %v5491_v1  ;;  %v245_v36 = vrot.slane %v243_v31, 1  ;;  %v233_v42 = vrot.slane %v231_v34, 1  ;;  %v273_v46 = vshrl.u32 %v5637_v26, 16  ;;  %v5180_v49 = vld [vmem:[%s6870_s1 + $0x1a8] sm:$0xff]   ;;  %v5183_v51 = vld [vmem:[%s6870_s1 + $0x1b0] sm:$0xff]   ;;  %v271_v55 = vshrl.u32 %v5639_v27, 16 }
   0xd   :  { %4359 = vmatprep.subr.bf16.mxu0 %v5157_v10  ;;  %v240_v35 = vrot.slane %v238_v30, 1  ;;  %v228_v41 = vrot.slane %v226_v38, 1  ;;  %v5182_v50 = vld [vmem:[%s6870_s1 + $0x8] sm:$0xff]   ;;  %v5184_v52 = vld [vmem:[%s6870_s1 + $0x50] sm:$0xff]   ;;  %v5187_v60 = vld [vmem:[%s6870_s1 + $0x58] sm:$0xff]  }
   0xe   :  { %v192_v53 = vld [vmem:[%s6869_s0 + $0x28] sm:$0x11]  ;;  %v5185_v59 = vld [vmem:[%s6870_s1 + $0x10] sm:$0xff]   ;;  %v5186_v4 = vld [vmem:[%s6870_s1 + $0x1b8] sm:$0xff]  }
   0xf   :  { %515 = vmatpush1.bf16.msra.mxu1 %v5158_v11  ;;  %v241_v40 = vor.u32 %v240_v35, %v236_v29  ;;  %v229_v44 = vor.u32 %v228_v41, %v224_v37  ;;  %v5189_v54 = vld [vmem:[%s6869_s0 + $0xc] ss:$16 sps:$4 sm:$0xff]   ;;  %v5693_v56 = vcombine.high %v192_v53, %v192_v53  ;;  %v5698_v57 = vld [vmem:[%s6869_s0 + $0x8] ss:$16 sps:$4 sm:$0xff]   ;;  %v5700_v58 = vcombine.low %v192_v53, %v192_v53  ;;  %v5201_v23 = vld [vmem:[%s6870_s1 + $0x90] sm:$0xff]  }
  0x10   :  { %4360 = vmatpush3.bf16.msra.mxu0 %v5159_v12  ;;  %516 = vmatprep.subr.bf16.mxu1 %v5491_v1  ;;  %v260_v61 = vshrl.u32 %v5189_v54, 16  ;;  %v262_v62 = vshll.u32 %v5189_v54, 16  ;;  %v248_v0 = vshrl.u32 %v5698_v57, 16  ;;  %v250_v2 = vshll.u32 %v5698_v57, 16  ;;  %v5188_v6 = vld [vmem:[%s6870_s1 + $0x18] sm:$0xff]   ;;  %v5194_v12 = vld [vmem:[%s6870_s1 + $0x60] sm:$0xff]  }
  0x11   :  { %4361 = vmatprep.subr.bf16.mxu0 %v5160_v13  ;;  %v246_v43 = vsel %vm222_vm0, %v241_v40, %v245_v36  ;;  %v234_v48 = vsel %vm222_vm0, %v229_v44, %v233_v42  ;;  %v267_v63 = vshll.u32 %v5693_v56, 16  ;;  %v255_v3 = vshll.u32 %v5700_v58, 16  ;;  %v5205_v29 = vld [vmem:[%s6870_s1 + $0x38] sm:$0xff]   ;;  %v5210_v30 = vld [vmem:[%s6870_s1 + $0x1c0] sm:$0xff]   ;;  %v5212_v34 = vld [vmem:[%s6870_s1 + $0x1c8] sm:$0xff]  }
  0x12   :  { %492 = vmatprep.mubr.bf16.mxu0 %v246_v43  ;;  %v264_v5 = vrot.slane %v262_v62, 1  ;;  %v252_v8 = vrot.slane %v250_v2, 1  ;;  %v5206_v31 = vld [vmem:[%s6870_s1 + $0xa0] sm:$0xff]   ;;  %v5214_v37 = vld [vmem:[%s6870_s1 + $0x1d0] sm:$0xff]   ;;  %v5209_v41 = vld [vmem:[%s6870_s1 + $0xb8] sm:$0xff]  }
  0x13   :  { %517 = vmatpush1.bf16.msra.mxu1 %v5161_v14  ;;  %v269_v7 = vrot.slane %v267_v63, 1  ;;  %v257_v9 = vrot.slane %v255_v3, 1  ;;  %v5195_v14 = vld [vmem:[%s6870_s1 + $0x80] sm:$0xff]   ;;  %v5213_v43 = vld [vmem:[%s6870_s1 + $0xc8] sm:$0xff]   ;;  %v5217_v44 = vld [vmem:[%s6870_s1 + $0xd8] sm:$0xff]  }
  0x14   :  { %4362 = vmatpush3.bf16.msra.mxu0 %v5162_v15  ;;  %518 = vmatprep.subr.bf16.mxu1 %v5491_v1  ;;  %v265_v10 = vor.u32 %v264_v5, %v260_v61  ;;  %v253_v11 = vor.u32 %v252_v8, %v248_v0  ;;  %v277_v15 = vshrl.u32 %v5693_v56, 16  ;;  %v5218_v35 = vld [vmem:[%s6869_s0] ss:$16 sps:$4 sm:$0xfe]  }
  0x15   :  { %4363 = vmatprep.subr.bf16.mxu0 %v5163_v16  ;;  %v5219_v36 = vld [vmem:[%s6869_s0 + $0x20] ss:$0 sps:$4 sm:$0x33]   ;;  %v839_v38 = vrot.slane %v5218_v35, 1 }
  0x16   :  { %v270_v13 = vsel %vm222_vm0, %v265_v10, %v269_v7  ;;  %v258_v16 = vsel %vm222_vm0, %v253_v11, %v257_v9  ;;  %v840_v40 = vrot.slane %v5219_v36, 1 }
  0x17   :  { %519 = vmatpush1.bf16.msra.mxu1 %v5164_v17  ;;  %4112 = vmatprep.mubr.msk.bf16.mxu1 %vm453_vm1, %v270_v13  ;;  %v5196_v17 = vld [vmem:[%s6870_s1 + $0x20] sm:$0xff]  }
  0x18   :  { %4364 = vmatpush3.bf16.msra.mxu0 %v5165_v18  ;;  %520 = vmatprep.subr.bf16.mxu1 %v5491_v1  ;;  %v5197_v18 = vld [vmem:[%s6870_s1 + $0x68] sm:$0xff]   ;;  %v841_v42 = vsel %vm838_vm2, %v839_v38, %v840_v40 }
  0x19   :  { %4365 = vmatprep.subr.bf16.mxu0 %v5166_v19  ;;  %v5198_v19 = vld [vmem:[%s6870_s1 + $0x88] sm:$0xff]  }
  0x1b   :  { %521 = vmatpush1.bf16.msra.mxu1 %v5167_v20  ;;  %v5199_v20 = vld [vmem:[%s6870_s1 + $0x28] sm:$0xff]  }
  0x1c   :  { %4366 = vmatpush3.bf16.msra.mxu0 %v5168_v21  ;;  %522 = vmatprep.subr.bf16.mxu1 %v5491_v1  ;;  %v5200_v21 = vld [vmem:[%s6870_s1 + $0x70] sm:$0xff]  }
  0x1d   :  { %4367 = vmatprep.subr.bf16.mxu0 %v5169_v22  ;;  %v275_v22 = vshrl.u32 %v5700_v58, 16 }
  0x1f   :  { %523 = vmatpush1.bf16.msra.mxu1 %v5170_v24  ;;  %v5202_v24 = vld [vmem:[%s6870_s1 + $0x30] sm:$0xff]  }
  0x20   :  { %4368 = vmatpush3.bf16.msra.mxu0 %v5171_v28  ;;  %524 = vmatprep.subr.bf16.mxu1 %v5491_v1  ;;  %v5204_v28 = vld [vmem:[%s6870_s1 + $0x98] sm:$0xff]  }
  0x21   :  { %4381 = vmatprep.subr.bf16.mxu0 %v5176_v33  ;;  %v5207_v33 = vld [vmem:[%s6870_s1 + $0xa8] sm:$0xff]  }
  0x23   :  { %525 = vmatpush1.bf16.msra.mxu1 %v5175_v39  ;;  %493 = vmatmul.mubr.bf16.vlgmr.msra.gmra.mrb[0].mxu0 %v234_v48  ;;  %v5208_v39 = vld [vmem:[%s6870_s1 + $0xb0] sm:$0xff]  }
  0x24   :  { %526 = vmatprep.subr.bf16.mxu1 %v5491_v1  ;;  %4382 = vmatpush3.bf16.msra.mxu0 %v5179_v45 }
  0x25   :  { %500 = vmatprep.mubr.bf16.mxu0 %v273_v46  ;;  %4383 = vmatprep.subr.bf16.mxu0 %v5181_v47 }
  0x27   :  { %527 = vmatpush1.bf16.msra.mxu1 %v5180_v49 }
  0x28   :  { %528 = vmatprep.subr.bf16.mxu1 %v5491_v1  ;;  %4384 = vmatpush3.bf16.msra.mxu0 %v5182_v50 }
  0x29   :  { %4385 = vmatprep.subr.bf16.mxu0 %v5184_v52 }
  0x2b   :  { %529 = vmatpush1.bf16.msra.mxu1 %v5183_v51  ;;  %501 = vmatmul.mubr.bf16.gmra.mrb[4].mxu0 %v271_v55 }
  0x2c   :  { %530 = vmatprep.subr.bf16.mxu1 %v5491_v1  ;;  %4386 = vmatpush3.bf16.msra.mxu0 %v5185_v59 }
  0x2d   :  { %766 = vmatprep.mubr.bf16.mxu0 %v5635_v25  ;;  %4387 = vmatprep.subr.bf16.mxu0 %v5187_v60  ;;  %v5203_v25 = vld [vmem:[%s6870_s1 + $0x78] sm:$0xff]  }
  0x2f   :  { %531 = vmatpush1.bf16.msra.mxu1 %v5186_v4 }
  0x30   :  { %782 = vmatprep.subr.bf16.mxu1 %v5491_v1  ;;  %4388 = vmatpush3.bf16.msra.mxu0 %v5188_v6 }
  0x31   :  { %4389 = vmatprep.subr.bf16.mxu0 %v5194_v12 }
  0x32   :  { %541 = vmatmul.mubr.bf16.vlgmr.msra.gmra.mrb[0].mxu1 %v258_v16 }
  0x33   :  { %783 = vmatpush1.bf16.msra.mxu1 %v5195_v14  ;;  %4113 = vmatprep.mubr.msk.bf16.mxu1 %vm453_vm1, %v277_v15 }
  0x34   :  { %784 = vmatprep.subr.bf16.mxu1 %v5491_v1  ;;  %4390 = vmatpush3.bf16.msra.mxu0 %v5196_v17 }
  0x35   :  { %4391 = vmatprep.subr.bf16.mxu0 %v5197_v18 }
  0x37   :  { %785 = vmatpush1.bf16.msra.mxu1 %v5198_v19 }
  0x38   :  { %786 = vmatprep.subr.bf16.mxu1 %v5491_v1  ;;  %4392 = vmatpush3.bf16.msra.mxu0 %v5199_v20 }
  0x39   :  { %4393 = vmatprep.subr.bf16.mxu0 %v5200_v21 }
  0x3a   :  { %549 = vmatmul.mubr.bf16.gmra.mrb[4].mxu1 %v275_v22 }
  0x3b   :  { %787 = vmatpush1.bf16.msra.mxu1 %v5201_v23  ;;  %4142 = vmatprep.mubr.msk.bf16.mxu1 %vm453_vm1, %v5189_v54 }
  0x3c   :  { %788 = vmatprep.subr.bf16.mxu1 %v5491_v1  ;;  %4394 = vmatpush3.bf16.msra.mxu0 %v5202_v24 }
  0x3d   :  { %4395 = vmatprep.subr.bf16.mxu0 %v5203_v25 }
  0x3f   :  { %789 = vmatpush1.bf16.msra.mxu1 %v5204_v28 }
  0x40   :  { %790 = vmatprep.subr.bf16.mxu1 %v5491_v1  ;;  %4396 = vmatpush3.bf16.msra.mxu0 %v5205_v29 }
  0x41   :  { %4661 = vmatprep.subr.bf16.mxu0 %v5210_v30 }
  0x43   :  { %791 = vmatpush1.bf16.msra.mxu1 %v5206_v31  ;;  %767 = vmatmul.mubr.bf16.vlgmr.msra.gmra.mrb[8].mxu0 %v5650_v32  ;;  %v5216_v32 = vld [vmem:[%s6870_s1 + $0x1d8] sm:$0xff]  }
  0x44   :  { %792 = vmatprep.subr.bf16.mxu1 %v5491_v1  ;;  %774 = vmatprep.mubr.bf16.mxu0 %v5637_v26  ;;  %v5211_v26 = vld [vmem:[%s6870_s1 + $0xc0] sm:$0xff]  }
  0x45   :  { %4662 = vmatpush3.bf16.msra.mxu0 %v5210_v30 }
  0x46   :  { %4663 = vmatprep.subr.bf16.mxu0 %v5212_v34 }
  0x47   :  { %793 = vmatpush1.bf16.msra.mxu1 %v5207_v33 }
  0x48   :  { %794 = vmatprep.subr.bf16.mxu1 %v5491_v1 }
  0x49   :  { %4664 = vmatpush3.bf16.msra.mxu0 %v5212_v34 }
  0x4a   :  { %4665 = vmatprep.subr.bf16.mxu0 %v5214_v37 }
  0x4b   :  { %795 = vmatpush1.bf16.msra.mxu1 %v5208_v39  ;;  %775 = vmatmul.mubr.bf16.gmra.mrb[12].mxu0 %v5639_v27  ;;  %v5215_v27 = vld [vmem:[%s6870_s1 + $0xd0] sm:$0xff]  }
  0x4c   :  { %796 = vmatprep.subr.bf16.mxu1 %v5491_v1  ;;  %4669 = vmatprep.mubr.msk.bf16.mxu0 %vm453_vm1, %v841_v42 }
  0x4d   :  { %4666 = vmatpush3.bf16.msra.mxu0 %v5214_v37 }
  0x4e   :  { %4667 = vmatprep.subr.bf16.mxu0 %v5216_v32 }
  0x4f   :  { %797 = vmatpush1.bf16.msra.mxu1 %v5209_v41 }
  0x50   :  { %798 = vmatprep.subr.bf16.mxu1 %v5491_v1 }
  0x51   :  { %4668 = vmatpush3.bf16.msra.mxu0 %v5216_v32 }
  0x53   :  { %799 = vmatpush1.bf16.msra.mxu1 %v5211_v26 }
  0x54   :  { %800 = vmatprep.subr.bf16.mxu1 %v5491_v1  ;;  %4670 = vmatmul.mubr.msk.bf16.vlgmr.msra.gmra.mrb[16].mxu0 %vm453_vm1, %v840_v40 }
  0x57   :  { %801 = vmatpush1.bf16.msra.mxu1 %v5213_v43 }
  0x58   :  { %802 = vmatprep.subr.bf16.mxu1 %v5491_v1 }
  0x5b   :  { %803 = vmatpush1.bf16.msra.mxu1 %v5215_v27 }
  0x5c   :  { %804 = vmatprep.subr.bf16.mxu1 %v5491_v1 }
  0x5f   :  { %805 = vmatpush1.bf16.msra.mxu1 %v5217_v44 }
  0x62   :  { %815 = vmatmul.mubr.bf16.vlgmr.msra.gmra.mrb[0].mxu1 %v5698_v57 }
  0x63   :  { %4143 = vmatprep.mubr.msk.bf16.mxu1 %vm453_vm1, %v5693_v56 }
  0x6a   :  { %823 = vmatmul.mubr.bf16.gmra.mrb[8].mxu1 %v5700_v58 }
  0x6b   :  { %15 = vsyncpa [#allocation3], 0  ;;  %v4152_v19 = vld [vmem:[%s6871_s2] ss:$0 sm:$0xff]  ;;  %v5492_v43 = vmov 0.0   ;;  %s5493_s11 = smov 64  }
  0x6c   :  { %4673 = vmatprep.subr.bf16.mxu0 %v5492_v43  ;;  %4681 = vmatprep.subr.bf16.mxu1 %v5492_v43  ;;  %vm5494_vm3 = vmmov 0   ;;  %vm976_vm4 = vcmask 1040384   ;;  %vm972_vm5 = vcmask 138240  }
  0x6d   :  { %4677 = vmatprep.mubr.msk.bf16.mxu0 %vm5494_vm3, %v5492_v43  ;;  %4689 = vmatprep.mubr.msk.bf16.mxu1 %vm5494_vm3, %v5492_v43 }
  0xf6   :  { %v4369_v45 = vpop.f32.mrb[0].mxu0 }
  0xf7   :  { %v4370_v46 = vpop.f32.mrb[1].mxu0 }
  0xf8   :  { %v4371_v47 = vadd.f32 %v4370_v46, %v4369_v45  ;;  %v4372_v48 = vpop.f32.mrb[2].mxu0  ;;  %v5221_v46 = vld [vmem:[%s6873_s4 + $0x20] sm:$0xff]  }
  0xf9   :  { %v4373_v49 = vpop.f32.mrb[3].mxu0  ;;  %4682 = vmatpush3.bf16.msra.mxu1 %v5221_v46  ;;  %v5259_v46 = vld [vmem:[%s6873_s4 + $0xf8] sm:$0xff]  }
  0xfa   :  { %v4374_v50 = vadd.f32 %v4373_v49, %v4372_v48  ;;  %4683 = vmatprep.subr.bf16.mxu1 %v5492_v43  ;;  %v5225_v49 = vld [vmem:[%s6873_s4 + $0x30] sm:$0xff]  }
  0xfe   :  { %v4375_v51 = vpop.f32.mrb[4].mxu0 }
  0xff   :  { %v4376_v52 = vpop.f32.mrb[5].mxu0 }
 0x100   :  { %v4377_v53 = vadd.f32 %v4376_v52, %v4375_v51  ;;  %v4378_v54 = vpop.f32.mrb[6].mxu0 }
 0x101   :  { %v4379_v55 = vpop.f32.mrb[7].mxu0 }
 0x10d   :  { %v550_v59 = vpop.f32.mrb[4].mxu1 }
 0x10e   :  { %v551_v60 = vadd.f32 %v4377_v53, %v550_v59  ;;  %v552_v57 = vpop.f32.mrb[5].mxu1 }
 0x10f   :  { %v553_v61 = vpop.f32.mrb[6].mxu1 }
 0x110   :  { %v554_v62 = vpop.f32.mrb[7].mxu1 }
 0x111   :  { %v5220_v62 = vld [vmem:[%s6872_s3] sm:$0xff]  }
 0x116   :  { %v4397_v56 = vpop.f32.mrb[8].mxu0 }
 0x117   :  { %v4398_v63 = vpop.f32.mrb[9].mxu0 }
 0x118   :  { %v4399_v58 = vadd.f32 %v4398_v63, %v4397_v56  ;;  %v4400_v0 = vpop.f32.mrb[10].mxu0  ;;  %v5222_v56 = vld [vmem:[%s6873_s4 + $0x40] sm:$0xff]   ;;  %v5224_v63 = vld [vmem:[%s6873_s4 + $0x48] sm:$0xff]  }
 0x119   :  { %v4401_v2 = vpop.f32.mrb[11].mxu0 }
 0x11a   :  { %v4402_v3 = vadd.f32 %v4401_v2, %v4400_v0  ;;  %v5125_v4 = vadd.f32 %v4399_v58, %v4371_v47  ;;  %v5223_v47 = vld [vmem:[%s6873_s4 + $0x28] sm:$0xff]   ;;  %v5226_v58 = vld [vmem:[%s6873_s4 + $0x50] sm:$0xff]   ;;  %v5227_v0 = vld [vmem:[%s6873_s4 + $0x38] sm:$0xff]  }
 0x11b   :  { %4684 = vmatpush3.bf16.msra.mxu1 %v5223_v47  ;;  %v5228_v2 = vld [vmem:[%s6873_s4 + $0x58] sm:$0xff]  }
 0x11c   :  { %v5127_v5 = vadd.f32 %v4402_v3, %v4374_v50  ;;  %4685 = vmatprep.subr.bf16.mxu1 %v5492_v43  ;;  %v5260_v47 = vld [vmem:[%s6873_s4 + $0x158] sm:$0xff]  }
 0x11e   :  { %v4403_v6 = vpop.f32.mrb[12].mxu0 }
 0x11f   :  { %v4404_v7 = vpop.f32.mrb[13].mxu0  ;;  %4686 = vmatpush3.bf16.msra.mxu1 %v5225_v49  ;;  %v5262_v49 = vld [vmem:[%s6873_s4 + $0x180] sm:$0xff]  }
 0x120   :  { %v4405_v8 = vadd.f32 %v4404_v7, %v4403_v6  ;;  %v4406_v9 = vpop.f32.mrb[14].mxu0  ;;  %4687 = vmatprep.subr.bf16.mxu1 %v5492_v43 }
 0x121   :  { %v4407_v10 = vpop.f32.mrb[15].mxu0  ;;  %v5230_v9 = vld [vmem:[%s6873_s4 + $0x80] sm:$0xff]  }
 0x122   :  { %v777_v11 = vadd.f32 %v4405_v8, %v551_v60  ;;  %v5852_v60 = vsel %vm976_vm4, 65535, %v5491_v1  ;;  %v5229_v8 = vld [vmem:[%s6873_s4] sm:$0xff]  }
 0x123   :  { %4688 = vmatpush3.bf16.msra.mxu1 %v5227_v0  ;;  %v5272_v0 = vld [vmem:[%s6873_s4 + $0x1c8] sm:$0xff]  }
 0x124   :  { %4693 = vmatprep.subr.bf16.mxu1 %v5492_v43 }
 0x127   :  { %v4671_v12 = vpop.f32.mrb[16].mxu0 }
 0x128   :  { %v906_v13 = vpop.f32.mrb[17].mxu0 }
 0x129   :  { %v4672_v14 = vpop.f32.mrb[18].mxu0 }
 0x12a   :  { %v909_v15 = vpop.f32.mrb[19].mxu0  ;;  %v5233_v14 = vld [vmem:[%s6873_s4 + $0x10] sm:$0xff]  }
 0x135   :  { %v816_v16 = vpop.f32.mrb[0].mxu1 }
 0x136   :  { %v5126_v17 = vadd.f32 %v5125_v4, %v816_v16  ;;  %v818_v18 = vpop.f32.mrb[1].mxu1  ;;  %v5235_v16 = vld [vmem:[%s6873_s4 + $0x18] sm:$0xff]  }
 0x137   :  { %v819_v20 = vpop.f32.mrb[2].mxu1  ;;  %v5237_v18 = vld [vmem:[%s6873_s4 + $0x60] sm:$0xff]  }
 0x138   :  { %v920_v21 = vadd.f32 %v5126_v17, %v906_v13  ;;  %v5128_v22 = vadd.f32 %v5127_v5, %v819_v20  ;;  %v821_v23 = vpop.f32.mrb[3].mxu1  ;;  %v5232_v13 = vld [vmem:[%s6873_s4 + $0x88] sm:$0xff]   ;;  %v5236_v17 = vld [vmem:[%s6873_s4 + $0x98] sm:$0xff]  }
 0x139   :  { %v5241_v23 = vld [vmem:[%s6873_s4 + $0x70] sm:$0xff]  }
 0x13a   :  { %v929_v24 = vadd.f32 %v4152_v19, %v920_v21  ;;  %v921_v25 = vadd.f32 %v5128_v22, %v909_v15  ;;  %v5234_v15 = vld [vmem:[%s6873_s4 + $0x90] sm:$0xff]   ;;  %v5239_v21 = vld [vmem:[%s6873_s4 + $0x68] sm:$0xff]  }
 0x13b   :  { %v5240_v22 = vld [vmem:[%s6873_s4 + $0xc8] sm:$0xff]  }
 0x13c   :  { %v4153_v28 = vmul.f32 -1.442695, %v929_v24  ;;  %v930_v29 = vadd.f32 %v4152_v19, %v921_v25  ;;  %v5243_v25 = vld [vmem:[%s6873_s4 + $0x78] sm:$0xff]  }
 0x13d   :  { %v824_v30 = vpop.f32.mrb[8].mxu1 }
 0x13e   :  { %5365 = vpow2.f32 %v4153_v28  ;;  %v4154_v31 = vmul.f32 -1.442695, %v930_v29  ;;  %v825_v33 = vadd.f32 %v824_v30, %v777_v11  ;;  %v826_v34 = vpop.f32.mrb[9].mxu1  ;;  %v5244_v28 = vld [vmem:[%s6873_s4 + $0xd8] sm:$0xff]   ;;  %v5246_v30 = vld [vmem:[%s6873_s4 + $0x100] sm:$0xff]  }
 0x13f   :  { %v827_v35 = vpop.f32.mrb[10].mxu1  ;;  %v5247_v34 = vld [vmem:[%s6873_s4 + $0xa8] sm:$0xff]  }
 0x140   :  { %5367 = vpow2.f32 %v4154_v31  ;;  %v922_v36 = vadd.f32 %v4671_v12, %v825_v33  ;;  %v828_v37 = vpop.f32.mrb[11].mxu1  ;;  %v5231_v12 = vld [vmem:[%s6873_s4 + $0x8] sm:$0xff]  }
 0x141   :  { %v5248_v35 = vld [vmem:[%s6873_s4 + $0x108] sm:$0xff]   ;;  %v5250_v37 = vld [vmem:[%s6873_s4 + $0x110] sm:$0xff]  }
 0x142   :  { %v931_v38 = vadd.f32 %v4152_v19, %v922_v36  ;;  %v5238_v19 = vld [vmem:[%s6873_s4 + $0xc0] sm:$0xff]   ;;  %v5249_v36 = vld [vmem:[%s6873_s4 + $0xb0] sm:$0xff]  }
 0x144   :  { %v4155_v39 = vmul.f32 -1.442695, %v931_v38 }
 0x146   :  { %5369 = vpow2.f32 %v4155_v39  ;;  %v5252_v39 = vld [vmem:[%s6873_s4 + $0x118] sm:$0xff]  }
 0x148   :  { %v5366_v40 = vpop.eup %5365 }
 0x149   :  { %v941_v32 = vadd.f32 1.0, %v5366_v40  ;;  %v5253_v40 = vld [vmem:[%s6873_s4 + $0xe0] sm:$0xff]  }
 0x14a   :  { %v5368_v41 = vpop.eup %5367 }
 0x14b   :  { %5371 = vrcp.f32 %v941_v32  ;;  %v942_v42 = vadd.f32 1.0, %v5368_v41  ;;  %v5254_v32 = vld [vmem:[%s6873_s4 + $0x140] sm:$0xff]  }
 0x14d   :  { %5373 = vrcp.f32 %v942_v42 }
 0x150   :  { %v5370_v26 = vpop.eup %5369 }
 0x151   :  { %v943_v27 = vadd.f32 1.0, %v5370_v26  ;;  %v5255_v26 = vld [vmem:[%s6873_s4 + $0xe8] sm:$0xff]  }
 0x153   :  { %5375 = vrcp.f32 %v943_v27  ;;  %v5256_v27 = vld [vmem:[%s6873_s4 + $0x148] sm:$0xff]  }
 0x155   :  { %v5372_v44 = vpop.eup %5371 }
 0x156   :  { %953 = vrot.lane.b32.xlu0 %v5372_v44, %s5493_s11  ;;  %v5257_v44 = vld [vmem:[%s6873_s4 + $0xf0] sm:$0xff]  }
 0x157   :  { %v5374_v45 = vpop.eup %5373 }
 0x15a   :  { %955 = vrot.lane.b32.xlu0 %v5374_v45, %s5493_s11  ;;  %v5258_v45 = vld [vmem:[%s6873_s4 + $0x150] sm:$0xff]  }
 0x15d   :  { %v5376_v48 = vpop.eup %5375 }
 0x15e   :  { %957 = vrot.lane.b32.xlu1 %v5376_v48, %s5493_s11  ;;  %v5261_v48 = vld [vmem:[%s6873_s4 + $0x120] sm:$0xff]  }
 0x1c8   :  { %v954_v50 = vpop.permute.xlu0 %953 }
 0x1c9   :  { %v962_v52 = vmul.f32 %v954_v50, %v929_v24  ;;  %v5242_v24 = vld [vmem:[%s6873_s4 + $0xd0] sm:$0xff]  }
 0x1cc   :  { %v956_v51 = vpop.permute.xlu0 %955 }
 0x1cd   :  { %v963_v53 = vmul.f32 %v956_v51, %v930_v29  ;;  %v5245_v29 = vld [vmem:[%s6873_s4 + $0xa0] sm:$0xff]  }
 0x1cf   :  { %v965_v54 = vpack.c.bf16 %v963_v53, %v962_v52  ;;  %v5263_v52 = vld [vmem:[%s6873_s4 + $0x128] sm:$0xff]  }
 0x1d0   :  { %v958_v55 = vpop.permute.xlu1 %957  ;;  %v5264_v53 = vld [vmem:[%s6873_s4 + $0x188] sm:$0xff]  }
 0x1d1   :  { %v964_v59 = vmul.f32 %v958_v55, %v931_v38  ;;  %4674 = vmatpush3.bf16.msra.mxu0 %v965_v54  ;;  %v5251_v38 = vld [vmem:[%s6873_s4 + $0xb8] sm:$0xff]   ;;  %v5265_v54 = vld [vmem:[%s6873_s4 + $0x130] sm:$0xff]  }
 0x1d2   :  { %4675 = vmatprep.subr.bf16.mxu0 %v5492_v43  ;;  %v5266_v55 = vld [vmem:[%s6873_s4 + $0x190] sm:$0xff]  }
 0x1d3   :  { %v966_v57 = vpack.c.bf16 %v964_v59, %v964_v59  ;;  %v5267_v59 = vld [vmem:[%s6873_s4 + $0x138] sm:$0xff]  }
 0x1d5   :  { %v980_v61 = vand.u32 %v5852_v60, %v966_v57  ;;  %v5268_v57 = vld [vmem:[%s6873_s4 + $0x198] sm:$0xff]  }
 0x1d7   :  { %4676 = vmatpush3.bf16.msra.mxu0 %v980_v61  ;;  %v5269_v61 = vld [vmem:[%s6873_s4 + $0x160] sm:$0xff]  }
 0x1d8   :  { %4705 = vmatprep.subr.bf16.mxu0 %v5492_v43 }
 0x1da   :  { %4678 = vmatmul.mubr.msk.bf16.vlgmr.msra.gmra.mrb[20].mxu0 %vm972_vm5, %v5220_v62  ;;  %v5270_v62 = vld [vmem:[%s6873_s4 + $0x1c0] sm:$0xff]  }
 0x1db   :  { %4706 = vmatpush3.bf16.msra.mxu0 %v5222_v56  ;;  %4713 = vmatprep.mubr.msk.bf16.mxu0 %vm5494_vm3, %v5492_v43 }
 0x1dc   :  { %4707 = vmatprep.subr.bf16.mxu0 %v5492_v43 }
 0x1df   :  { %4708 = vmatpush3.bf16.msra.mxu0 %v5224_v63 }
 0x1e0   :  { %4709 = vmatprep.subr.bf16.mxu0 %v5492_v43 }
 0x1e3   :  { %4710 = vmatpush3.bf16.msra.mxu0 %v5226_v58  ;;  %v5271_v58 = vld [vmem:[%s6873_s4 + $0x168] sm:$0xff]  }
 0x1e4   :  { %4711 = vmatprep.subr.bf16.mxu0 %v5492_v43 }
 0x1e7   :  { %4712 = vmatpush3.bf16.msra.mxu0 %v5228_v2  ;;  %v5273_v2 = vld [vmem:[%s6873_s4 + $0x170] sm:$0xff]  }
 0x1e8   :  { %4729 = vmatprep.subr.bf16.mxu0 %v5492_v43 }
 0x2ad   :  { %v1016_v3 = vpop.f32.mrb[20].mxu0 }
 0x2ae   :  { %v4679_v4 = vpop.f32.mrb[21].mxu0 }
 0x2af   :  { %v1019_v5 = vpop.f32.mrb[22].mxu0  ;;  %v5275_v4 = vld [vmem:[%s6873_s4 + $0x178] sm:$0xff]  }
 0x2b0   :  { %v5883_v6 = vpack.c.bf16 %v1019_v5, %v1016_v3  ;;  %v4680_v7 = vpop.f32.mrb[23].mxu0  ;;  %v5274_v3 = vld [vmem:[%s6873_s4 + $0x1d0] sm:$0xff]   ;;  %v5276_v5 = vld [vmem:[%s6873_s4 + $0x1d8] sm:$0xff]  }
 0x2b1   :  { %v5277_v7 = vld [vmem:[%s6873_s4 + $0x1a0] sm:$0xff]  }
 0x2b2   :  { %v5892_v10 = vshrl.u32 %v5883_v6, 16  ;;  %v1185_v11 = vrot.slane %v5883_v6, 1  ;;  %v1339_v20 = vrot.slane %v5883_v6, 2  ;;  %v1493_v33 = vrot.slane %v5883_v6, 3 }
 0x2b3   :  { %v1647_v42 = vrot.slane %v5883_v6, 4  ;;  %v1801_v51 = vrot.slane %v5883_v6, 5  ;;  %v1955_v63 = vrot.slane %v5883_v6, 6 }
 0x2b4   :  { %4690 = vmatmul.mubr.msk.bf16.vlgmr.msra.gmra.mrb[12].mxu1 %vm453_vm1, %v5892_v10  ;;  %4714 = vmatmul.mubr.msk.bf16.vlgmr.msra.gmra.mrb[24].mxu0 %vm453_vm1, %v1185_v11  ;;  %v1262_v31 = vrot.slane %v5892_v10, 1  ;;  %v1416_v41 = vrot.slane %v5892_v10, 2  ;;  %v1570_v50 = vrot.slane %v5892_v10, 3  ;;  %v1724_v56 = vrot.slane %v5892_v10, 4  ;;  %v5278_v11 = vld [vmem:[%s6873_s4 + $0x1a8] sm:$0xff]  }
 0x2b5   :  { %4694 = vmatpush3.bf16.msra.mxu1 %v5229_v8  ;;  %4730 = vmatpush3.bf16.msra.mxu0 %v5230_v9  ;;  %v1878_v8 = vrot.slane %v5892_v10, 5  ;;  %v2109_v9 = vrot.slane %v5883_v6, 7 }
 0x2b6   :  { %4695 = vmatprep.subr.bf16.mxu1 %v5492_v43  ;;  %4731 = vmatprep.subr.bf16.mxu0 %v5492_v43 }
 0x2b7   :  { %4701 = vmatprep.mubr.msk.bf16.mxu1 %vm5494_vm3, %v5492_v43  ;;  %4737 = vmatprep.mubr.msk.bf16.mxu0 %vm5494_vm3, %v5492_v43 }
 0x2b9   :  { %4696 = vmatpush3.bf16.msra.mxu1 %v5231_v12  ;;  %4732 = vmatpush3.bf16.msra.mxu0 %v5232_v13  ;;  %v5280_v12 = vld [vmem:[%s6873_s4 + $0x1b8] sm:$0xff]   ;;  %v2032_v13 = vrot.slane %v5892_v10, 6 }
 0x2ba   :  { %4697 = vmatprep.subr.bf16.mxu1 %v5492_v43  ;;  %4733 = vmatprep.subr.bf16.mxu0 %v5492_v43 }
 0x2bd   :  { %4698 = vmatpush3.bf16.msra.mxu1 %v5233_v14  ;;  %4734 = vmatpush3.bf16.msra.mxu0 %v5234_v15 }
 0x2be   :  { %4699 = vmatprep.subr.bf16.mxu1 %v5492_v43  ;;  %4735 = vmatprep.subr.bf16.mxu0 %v5492_v43 }
 0x2c1   :  { %4700 = vmatpush3.bf16.msra.mxu1 %v5235_v16  ;;  %4736 = vmatpush3.bf16.msra.mxu0 %v5236_v17 }
 0x2c2   :  { %4717 = vmatprep.subr.bf16.mxu1 %v5492_v43  ;;  %4753 = vmatprep.subr.bf16.mxu0 %v5492_v43 }
 0x2c4   :  { %4702 = vmatmul.mubr.msk.bf16.vlgmr.msra.gmra.mrb[16].mxu1 %vm453_vm1, %v5883_v6  ;;  %4738 = vmatmul.mubr.msk.bf16.vlgmr.msra.gmra.mrb[28].mxu0 %vm453_vm1, %v1339_v20  ;;  %v5279_v6 = vld [vmem:[%s6873_s4 + $0x1b0] sm:$0xff]  }
 0x2c5   :  { %4718 = vmatpush3.bf16.msra.mxu1 %v5237_v18  ;;  %4754 = vmatpush3.bf16.msra.mxu0 %v5238_v19 }
 0x2c6   :  { %4719 = vmatprep.subr.bf16.mxu1 %v5492_v43  ;;  %4755 = vmatprep.subr.bf16.mxu0 %v5492_v43 }
 0x2c7   :  { %4725 = vmatprep.mubr.msk.bf16.mxu1 %vm5494_vm3, %v5492_v43  ;;  %4761 = vmatprep.mubr.msk.bf16.mxu0 %vm5494_vm3, %v5492_v43 }
 0x2c9   :  { %4720 = vmatpush3.bf16.msra.mxu1 %v5239_v21  ;;  %4756 = vmatpush3.bf16.msra.mxu0 %v5240_v22 }
 0x2ca   :  { %4721 = vmatprep.subr.bf16.mxu1 %v5492_v43  ;;  %4757 = vmatprep.subr.bf16.mxu0 %v5492_v43 }
 0x2cd   :  { %4722 = vmatpush3.bf16.msra.mxu1 %v5241_v23  ;;  %4758 = vmatpush3.bf16.msra.mxu0 %v5242_v24 }
 0x2ce   :  { %4723 = vmatprep.subr.bf16.mxu1 %v5492_v43  ;;  %4759 = vmatprep.subr.bf16.mxu0 %v5492_v43 }
 0x2d1   :  { %4724 = vmatpush3.bf16.msra.mxu1 %v5243_v25  ;;  %4760 = vmatpush3.bf16.msra.mxu0 %v5244_v28  ;;  %v5281_v28 = vld [vmem:[%s6875_s6] sm:$0xff]  }
 0x2d2   :  { %4741 = vmatprep.subr.bf16.mxu1 %v5492_v43  ;;  %4777 = vmatprep.subr.bf16.mxu0 %v5492_v43 }
 0x2d4   :  { %4726 = vmatmul.mubr.msk.bf16.vlgmr.msra.gmra.mrb[20].mxu1 %vm453_vm1, %v1262_v31  ;;  %4762 = vmatmul.mubr.msk.bf16.vlgmr.msra.gmra.mrb[32].mxu0 %vm453_vm1, %v1493_v33 }
 0x2d5   :  { %4742 = vmatpush3.bf16.msra.mxu1 %v5245_v29  ;;  %4778 = vmatpush3.bf16.msra.mxu0 %v5246_v30 }
 0x2d6   :  { %4743 = vmatprep.subr.bf16.mxu1 %v5492_v43  ;;  %4779 = vmatprep.subr.bf16.mxu0 %v5492_v43 }
 0x2d7   :  { %4749 = vmatprep.mubr.msk.bf16.mxu1 %vm5494_vm3, %v5492_v43  ;;  %4785 = vmatprep.mubr.msk.bf16.mxu0 %vm5494_vm3, %v5492_v43 }
 0x2d9   :  { %4744 = vmatpush3.bf16.msra.mxu1 %v5247_v34  ;;  %4780 = vmatpush3.bf16.msra.mxu0 %v5248_v35  ;;  %v5282_v35 = vld [vmem:[%s6875_s6 + $0x8] sm:$0xff]  }
 0x2da   :  { %4745 = vmatprep.subr.bf16.mxu1 %v5492_v43  ;;  %4781 = vmatprep.subr.bf16.mxu0 %v5492_v43 }
 0x2dd   :  { %4746 = vmatpush3.bf16.msra.mxu1 %v5249_v36  ;;  %4782 = vmatpush3.bf16.msra.mxu0 %v5250_v37  ;;  %v5283_v36 = vld [vmem:[%s6875_s6 + $0x10] sm:$0xff]  }
 0x2de   :  { %4747 = vmatprep.subr.bf16.mxu1 %v5492_v43  ;;  %4783 = vmatprep.subr.bf16.mxu0 %v5492_v43 }
 0x2e1   :  { %4748 = vmatpush3.bf16.msra.mxu1 %v5251_v38  ;;  %4784 = vmatpush3.bf16.msra.mxu0 %v5252_v39 }
 0x2e2   :  { %4765 = vmatprep.subr.bf16.mxu1 %v5492_v43  ;;  %4801 = vmatprep.subr.bf16.mxu0 %v5492_v43 }
 0x2e4   :  { %4750 = vmatmul.mubr.msk.bf16.vlgmr.msra.gmra.mrb[24].mxu1 %vm453_vm1, %v1416_v41  ;;  %4786 = vmatmul.mubr.msk.bf16.vlgmr.msra.gmra.mrb[36].mxu0 %vm453_vm1, %v1647_v42 }
 0x2e5   :  { %4766 = vmatpush3.bf16.msra.mxu1 %v5253_v40  ;;  %4802 = vmatpush3.bf16.msra.mxu0 %v5254_v32 }
 0x2e6   :  { %4767 = vmatprep.subr.bf16.mxu1 %v5492_v43  ;;  %4803 = vmatprep.subr.bf16.mxu0 %v5492_v43 }
 0x2e7   :  { %4773 = vmatprep.mubr.msk.bf16.mxu1 %vm5494_vm3, %v5492_v43  ;;  %4809 = vmatprep.mubr.msk.bf16.mxu0 %vm5494_vm3, %v5492_v43 }
 0x2e9   :  { %4768 = vmatpush3.bf16.msra.mxu1 %v5255_v26  ;;  %4804 = vmatpush3.bf16.msra.mxu0 %v5256_v27 }
 0x2ea   :  { %4769 = vmatprep.subr.bf16.mxu1 %v5492_v43  ;;  %4805 = vmatprep.subr.bf16.mxu0 %v5492_v43 }
 0x2ed   :  { %4770 = vmatpush3.bf16.msra.mxu1 %v5257_v44  ;;  %4806 = vmatpush3.bf16.msra.mxu0 %v5258_v45 }
 0x2ee   :  { %4771 = vmatprep.subr.bf16.mxu1 %v5492_v43  ;;  %4807 = vmatprep.subr.bf16.mxu0 %v5492_v43 }
 0x2f1   :  { %4772 = vmatpush3.bf16.msra.mxu1 %v5259_v46  ;;  %4808 = vmatpush3.bf16.msra.mxu0 %v5260_v47 }
 0x2f2   :  { %4789 = vmatprep.subr.bf16.mxu1 %v5492_v43  ;;  %4825 = vmatprep.subr.bf16.mxu0 %v5492_v43 }
 0x2f4   :  { %4774 = vmatmul.mubr.msk.bf16.vlgmr.msra.gmra.mrb[28].mxu1 %vm453_vm1, %v1570_v50  ;;  %4810 = vmatmul.mubr.msk.bf16.vlgmr.msra.gmra.mrb[40].mxu0 %vm453_vm1, %v1801_v51 }
 0x2f5   :  { %4790 = vmatpush3.bf16.msra.mxu1 %v5261_v48  ;;  %4826 = vmatpush3.bf16.msra.mxu0 %v5262_v49 }
 0x2f6   :  { %4791 = vmatprep.subr.bf16.mxu1 %v5492_v43  ;;  %4827 = vmatprep.subr.bf16.mxu0 %v5492_v43 }
 0x2f7   :  { %4797 = vmatprep.mubr.msk.bf16.mxu1 %vm5494_vm3, %v5492_v43  ;;  %4833 = vmatprep.mubr.msk.bf16.mxu0 %vm5494_vm3, %v5492_v43 }
 0x2f9   :  { %4792 = vmatpush3.bf16.msra.mxu1 %v5263_v52  ;;  %4828 = vmatpush3.bf16.msra.mxu0 %v5264_v53 }
 0x2fa   :  { %4793 = vmatprep.subr.bf16.mxu1 %v5492_v43  ;;  %4829 = vmatprep.subr.bf16.mxu0 %v5492_v43 }
 0x2fd   :  { %4794 = vmatpush3.bf16.msra.mxu1 %v5265_v54  ;;  %4830 = vmatpush3.bf16.msra.mxu0 %v5266_v55 }
 0x2fe   :  { %4795 = vmatprep.subr.bf16.mxu1 %v5492_v43  ;;  %4831 = vmatprep.subr.bf16.mxu0 %v5492_v43 }
 0x301   :  { %4796 = vmatpush3.bf16.msra.mxu1 %v5267_v59  ;;  %4832 = vmatpush3.bf16.msra.mxu0 %v5268_v57 }
 0x302   :  { %4813 = vmatprep.subr.bf16.mxu1 %v5492_v43  ;;  %4849 = vmatprep.subr.bf16.mxu0 %v5492_v43 }
 0x304   :  { %4798 = vmatmul.mubr.msk.bf16.vlgmr.msra.gmra.mrb[32].mxu1 %vm453_vm1, %v1724_v56  ;;  %4834 = vmatmul.mubr.msk.bf16.vlgmr.msra.gmra.mrb[44].mxu0 %vm453_vm1, %v1955_v63 }
 0x305   :  { %4814 = vmatpush3.bf16.msra.mxu1 %v5269_v61  ;;  %4850 = vmatpush3.bf16.msra.mxu0 %v5270_v62 }
 0x306   :  { %4815 = vmatprep.subr.bf16.mxu1 %v5492_v43  ;;  %4851 = vmatprep.subr.bf16.mxu0 %v5492_v43 }
 0x307   :  { %4821 = vmatprep.mubr.msk.bf16.mxu1 %vm5494_vm3, %v5492_v43  ;;  %4857 = vmatprep.mubr.msk.bf16.mxu0 %vm5494_vm3, %v5492_v43 }
 0x309   :  { %4816 = vmatpush3.bf16.msra.mxu1 %v5271_v58  ;;  %4852 = vmatpush3.bf16.msra.mxu0 %v5272_v0 }
 0x30a   :  { %4817 = vmatprep.subr.bf16.mxu1 %v5492_v43  ;;  %4853 = vmatprep.subr.bf16.mxu0 %v5492_v43 }
 0x30d   :  { %4818 = vmatpush3.bf16.msra.mxu1 %v5273_v2  ;;  %4854 = vmatpush3.bf16.msra.mxu0 %v5274_v3 }
 0x30e   :  { %4819 = vmatprep.subr.bf16.mxu1 %v5492_v43  ;;  %4855 = vmatprep.subr.bf16.mxu0 %v5492_v43 }
 0x311   :  { %4820 = vmatpush3.bf16.msra.mxu1 %v5275_v4  ;;  %4856 = vmatpush3.bf16.msra.mxu0 %v5276_v5 }
 0x312   :  { %4837 = vmatprep.subr.bf16.mxu1 %v5492_v43  ;;  %4873 = vmatprep.subr.bf16.mxu0 %v5492_v43 }
 0x314   :  { %4822 = vmatmul.mubr.msk.bf16.vlgmr.msra.gmra.mrb[36].mxu1 %vm453_vm1, %v1878_v8  ;;  %4858 = vmatmul.mubr.msk.bf16.vlgmr.msra.gmra.mrb[48].mxu0 %vm453_vm1, %v2109_v9 }
 0x315   :  { %4838 = vmatpush3.bf16.msra.mxu1 %v5277_v7  ;;  %4845 = vmatprep.mubr.msk.bf16.mxu1 %vm5494_vm3, %v5492_v43 }
 0x316   :  { %4839 = vmatprep.subr.bf16.mxu1 %v5492_v43  ;;  %4889 = vmatprep.mubr.msk.bf16.mxu0 %vm5494_vm3, %v5492_v43 }
 0x319   :  { %4840 = vmatpush3.bf16.msra.mxu1 %v5278_v11 }
 0x31a   :  { %4841 = vmatprep.subr.bf16.mxu1 %v5492_v43 }
 0x31d   :  { %4842 = vmatpush3.bf16.msra.mxu1 %v5279_v6 }
 0x31e   :  { %4843 = vmatprep.subr.bf16.mxu1 %v5492_v43 }
 0x321   :  { %4844 = vmatpush3.bf16.msra.mxu1 %v5280_v12 }
 0x322   :  { %4861 = vmatprep.subr.bf16.mxu1 %v5492_v43 }
 0x324   :  { %4846 = vmatmul.mubr.msk.bf16.vlgmr.msra.gmra.mrb[40].mxu1 %vm453_vm1, %v2032_v13 }
 0x325   :  { %4869 = vmatprep.mubr.msk.bf16.mxu1 %vm5494_vm3, %v5492_v43  ;;  %4862 = vmatpush3.bf16.msra.mxu1 %v5281_v28  ;;  %v160_v28 = vld [vmem:[%s6874_s5] sm:$0x1] }
 0x326   :  { %4863 = vmatprep.subr.bf16.mxu1 %v5492_v43 }
 0x329   :  { %4864 = vmatpush3.bf16.msra.mxu1 %v5282_v35 }
 0x32a   :  { %4865 = vmatprep.subr.bf16.mxu1 %v5492_v43 }
 0x32d   :  { %4866 = vmatpush3.bf16.msra.mxu1 %v5283_v36  ;;  %v5284_v36 = vld [vmem:[%s6875_s6 + $0x18] sm:$0xff]  }
 0x32e   :  { %4867 = vmatprep.subr.bf16.mxu1 %v5492_v43 }
 0x331   :  { %4868 = vmatpush3.bf16.msra.mxu1 %v5284_v36  ;;  %v5424_v36 = vld [vmem:[%s6870_s1 + $0x28] sm:$0xff]  }
 0x387   :  { %v1104_v14 = vpop.f32.mrb[12].mxu1  ;;  %v1247_v15 = vpop.f32.mrb[24].mxu0 }
 0x388   :  { %v4691_v16 = vpop.f32.mrb[13].mxu1  ;;  %v4715_v17 = vpop.f32.mrb[25].mxu0 }
 0x389   :  { %v1107_v18 = vpop.f32.mrb[14].mxu1  ;;  %v1250_v19 = vpop.f32.mrb[26].mxu0 }
 0x38a   :  { %v4692_v20 = vpop.f32.mrb[15].mxu1  ;;  %v4716_v21 = vpop.f32.mrb[27].mxu0 }
 0x397   :  { %v1170_v22 = vpop.f32.mrb[16].mxu1  ;;  %v1401_v23 = vpop.f32.mrb[28].mxu0 }
 0x398   :  { %v1171_v24 = vadd.f32 %v1170_v22, %v1104_v14  ;;  %v4703_v25 = vpop.f32.mrb[17].mxu1  ;;  %v4739_v10 = vpop.f32.mrb[29].mxu0 }
 0x399   :  { %v1173_v29 = vpop.f32.mrb[18].mxu1  ;;  %v1404_v30 = vpop.f32.mrb[30].mxu0 }
 0x39a   :  { %v4704_v31 = vpop.f32.mrb[19].mxu1  ;;  %v4740_v33 = vpop.f32.mrb[31].mxu0  ;;  %v1253_v34 = vadd.f32 %v1247_v15, %v1171_v24 }
 0x3a7   :  { %v1324_v37 = vpop.f32.mrb[20].mxu1  ;;  %v1555_v38 = vpop.f32.mrb[32].mxu0 }
 0x3a8   :  { %v1330_v39 = vadd.f32 %v1324_v37, %v1253_v34  ;;  %v4727_v40 = vpop.f32.mrb[21].mxu1  ;;  %v4763_v32 = vpop.f32.mrb[33].mxu0 }
 0x3a9   :  { %v1327_v41 = vpop.f32.mrb[22].mxu1  ;;  %v1558_v42 = vpop.f32.mrb[34].mxu0  ;;  %v6186_v40 = vld [vmem:[%s6877_s8 + $0x8] sm:$0xff]   ;;  %v6193_v32 = vld [vmem:[%s6877_s8 + $0x10] sm:$0xff]  }
 0x3aa   :  { %v4728_v26 = vpop.f32.mrb[23].mxu1  ;;  %v4764_v27 = vpop.f32.mrb[35].mxu0  ;;  %v1407_v44 = vadd.f32 %v1401_v23, %v1330_v39  ;;  %v6180_v39 = vld [vmem:[%s6877_s8] sm:$0xff]   ;;  %v6201_v42 = vld [vmem:[%s6877_s8 + $0x18] sm:$0xff]  }
 0x3ab   :  { %4874 = vmatpush3.bf16.msra.mxu0 %v6180_v39  ;;  %v5289_v26 = vld [vmem:[%s6877_s8 + $0x20] sm:$0xff]   ;;  %v5290_v27 = vld [vmem:[%s6877_s8 + $0x28] sm:$0xff]  }
 0x3ac   :  { %4875 = vmatprep.subr.bf16.mxu0 %v5492_v43 }
 0x3af   :  { %4876 = vmatpush3.bf16.msra.mxu0 %v6186_v40 }
 0x3b0   :  { %4877 = vmatprep.subr.bf16.mxu0 %v5492_v43 }
 0x3b3   :  { %4878 = vmatpush3.bf16.msra.mxu0 %v6193_v32 }
 0x3b4   :  { %4879 = vmatprep.subr.bf16.mxu0 %v5492_v43 }
 0x3b7   :  { %v1478_v45 = vpop.f32.mrb[24].mxu1  ;;  %v1709_v46 = vpop.f32.mrb[36].mxu0  ;;  %4880 = vmatpush3.bf16.msra.mxu0 %v6201_v42 }
 0x3b8   :  { %v1484_v47 = vadd.f32 %v1478_v45, %v1407_v44  ;;  %v4751_v48 = vpop.f32.mrb[25].mxu1  ;;  %v4787_v49 = vpop.f32.mrb[37].mxu0  ;;  %4881 = vmatprep.subr.bf16.mxu0 %v5492_v43  ;;  %v5291_v44 = vld [vmem:[%s6877_s8 + $0x30] sm:$0xff]  }
 0x3b9   :  { %v1481_v50 = vpop.f32.mrb[26].mxu1  ;;  %v1712_v51 = vpop.f32.mrb[38].mxu0  ;;  %v5398_v48 = vld [vmem:[%s6870_s1 + $0xe0] sm:$0xff]   ;;  %v5399_v49 = vld [vmem:[%s6870_s1 + $0x128] sm:$0xff]  }
 0x3ba   :  { %v4752_v52 = vpop.f32.mrb[27].mxu1  ;;  %v4788_v53 = vpop.f32.mrb[39].mxu0  ;;  %v1561_v54 = vadd.f32 %v1555_v38, %v1484_v47  ;;  %v5397_v38 = vld [vmem:[%s6870_s1 + $0x120] sm:$0xff]   ;;  %v5400_v50 = vld [vmem:[%s6870_s1 + $0xe8] sm:$0xff]   ;;  %v5401_v51 = vld [vmem:[%s6870_s1 + $0x130] sm:$0xff]  }
 0x3bb   :  { %4507 = vmatprep.subr.bf16.mxu1 %v5397_v38  ;;  %4882 = vmatpush3.bf16.msra.mxu0 %v5289_v26  ;;  %v5402_v52 = vld [vmem:[%s6870_s1 + $0xf0] sm:$0xff]   ;;  %v5403_v53 = vld [vmem:[%s6870_s1 + $0x138] sm:$0xff]  }
 0x3bc   :  { %4883 = vmatprep.subr.bf16.mxu0 %v5492_v43  ;;  %v5425_v38 = vld [vmem:[%s6870_s1 + $0x70] sm:$0xff]   ;;  %v5427_v26 = vld [vmem:[%s6870_s1 + $0x78] sm:$0xff]  }
 0x3bf   :  { %4884 = vmatpush3.bf16.msra.mxu0 %v5290_v27  ;;  %v5428_v27 = vld [vmem:[%s6870_s1 + $0x38] sm:$0xff]  }
 0x3c0   :  { %4885 = vmatprep.subr.bf16.mxu0 %v5492_v43 }
 0x3c3   :  { %4886 = vmatpush3.bf16.msra.mxu0 %v5291_v44  ;;  %v5429_v44 = vld [vmem:[%s6870_s1 + $0x1c0] sm:$0xff]  }
 0x3c4   :  { %4887 = vmatprep.subr.bf16.mxu0 %v5492_v43 }
 0x3c7   :  { %v1632_v55 = vpop.f32.mrb[28].mxu1  ;;  %v1863_v59 = vpop.f32.mrb[40].mxu0 }
 0x3c8   :  { %v1638_v57 = vadd.f32 %v1632_v55, %v1561_v54  ;;  %v4775_v61 = vpop.f32.mrb[29].mxu1  ;;  %v4811_v62 = vpop.f32.mrb[41].mxu0  ;;  %v5404_v54 = vld [vmem:[%s6870_s1 + $0xf8] sm:$0xff]   ;;  %v5405_v55 = vld [vmem:[%s6870_s1 + $0x140] sm:$0xff]  }
 0x3c9   :  { %v1635_v56 = vpop.f32.mrb[30].mxu1  ;;  %v1866_v63 = vpop.f32.mrb[42].mxu0  ;;  %v5408_v61 = vld [vmem:[%s6870_s1 + $0x108] sm:$0xff]   ;;  %v5409_v62 = vld [vmem:[%s6870_s1 + $0x150] sm:$0xff]  }
 0x3ca   :  { %v4776_v58 = vpop.f32.mrb[31].mxu1  ;;  %v4812_v0 = vpop.f32.mrb[43].mxu0  ;;  %v1715_v2 = vadd.f32 %v1709_v46, %v1638_v57  ;;  %v5407_v57 = vld [vmem:[%s6870_s1 + $0x148] sm:$0xff]   ;;  %v5410_v56 = vld [vmem:[%s6870_s1 + $0x110] sm:$0xff]   ;;  %v5411_v63 = vld [vmem:[%s6870_s1 + $0x158] sm:$0xff]  }
 0x3cb   :  { %v5412_v58 = vld [vmem:[%s6870_s1 + $0x118] sm:$0xff]   ;;  %v5413_v0 = vld [vmem:[%s6870_s1 + $0x40] sm:$0xff]  }
 0x3d7   :  { %v1786_v3 = vpop.f32.mrb[32].mxu1  ;;  %v2017_v4 = vpop.f32.mrb[44].mxu0 }
 0x3d8   :  { %v1792_v5 = vadd.f32 %v1786_v3, %v1715_v2  ;;  %v4799_v7 = vpop.f32.mrb[33].mxu1  ;;  %v4835_v8 = vpop.f32.mrb[45].mxu0  ;;  %v6270_v2 = vld [vmem:[%s6877_s8 + $0x38] sm:$0xff]   ;;  %v5293_v3 = vld [vmem:[%s6869_s0 + $0x34] ss:$16 sps:$4 sm:$0xff]  }
 0x3d9   :  { %v1789_v9 = vpop.f32.mrb[34].mxu1  ;;  %v2020_v11 = vpop.f32.mrb[46].mxu0  ;;  %4888 = vmatpush3.bf16.msra.mxu0 %v6270_v2  ;;  %v2400_v8 = vshll.u32 %v5293_v3, 16 }
 0x3da   :  { %v4800_v6 = vpop.f32.mrb[35].mxu1  ;;  %v4836_v12 = vpop.f32.mrb[47].mxu0  ;;  %v1869_v13 = vadd.f32 %v1863_v59, %v1792_v5  ;;  %v5406_v59 = vld [vmem:[%s6870_s1 + $0x100] sm:$0xff]   ;;  %2501 = vmatprep.subr.bf16.mxu0 %v5491_v1 }
 0x3db   :  { %v5296_v5 = vld [vmem:[%s6869_s0 + $0x30] ss:$16 sps:$4 sm:$0xff]   ;;  %v2398_v6 = vshrl.u32 %v5293_v3, 16  ;;  %v2402_v12 = vrot.slane %v2400_v8, 1 }
 0x3dc   :  { %v2388_v11 = vshll.u32 %v5296_v5, 16 }
 0x3e7   :  { %v1940_v14 = vpop.f32.mrb[36].mxu1  ;;  %v2171_v15 = vpop.f32.mrb[48].mxu0 }
 0x3e8   :  { %v1946_v16 = vadd.f32 %v1940_v14, %v1869_v13  ;;  %v4823_v17 = vpop.f32.mrb[37].mxu1  ;;  %v4859_v18 = vpop.f32.mrb[49].mxu0  ;;  %v2386_v14 = vshrl.u32 %v5296_v5, 16 }
 0x3e9   :  { %v1943_v19 = vpop.f32.mrb[38].mxu1  ;;  %v2174_v20 = vpop.f32.mrb[50].mxu0  ;;  %v2403_v17 = vor.u32 %v2402_v12, %v2398_v6  ;;  %v5434_v6 = vld [vmem:[%s6870_s1 + $0x168] sm:$0xff]   ;;  %v5435_v12 = vld [vmem:[%s6870_s1 + $0x170] sm:$0xff]  }
 0x3ea   :  { %v4824_v21 = vpop.f32.mrb[39].mxu1  ;;  %v4860_v22 = vpop.f32.mrb[51].mxu0  ;;  %v2023_v23 = vadd.f32 %v2017_v4, %v1946_v16  ;;  %v4251_v4 = vld [vmem:[%s6869_s0 + $0x50] sm:$0x11] }
 0x3eb   :  { %v4261_v7 = vcombine.high %v4251_v4, %v4251_v4  ;;  %v4260_v9 = vcombine.low %v4251_v4, %v4251_v4 }
 0x3ed   :  { %v2405_v13 = vshll.u32 %v4261_v7, 16  ;;  %v2393_v16 = vshll.u32 %v4260_v9, 16 }
 0x3ef   :  { %v2407_v18 = vrot.slane %v2405_v13, 1  ;;  %v2395_v20 = vrot.slane %v2393_v16, 1  ;;  %v5436_v13 = vld [vmem:[%s6870_s1 + $0x178] sm:$0xff]   ;;  %v5439_v16 = vld [vmem:[%s6870_s1 + $0x190] sm:$0xff]  }
 0x3f1   :  { %v2408_v21 = vsel %vm222_vm0, %v2403_v17, %v2407_v18  ;;  %v5440_v17 = vld [vmem:[%s6870_s1 + $0x198] sm:$0xff]  }
 0x3f2   :  { %v6409_v18 = vld [vmem:[%s6869_s0 + $0x38] ss:$16 sps:$4 sm:$0xff]  }
 0x3f7   :  { %v2094_v24 = vpop.f32.mrb[40].mxu1 }
 0x3f8   :  { %v2100_v25 = vadd.f32 %v2094_v24, %v2023_v23  ;;  %v4847_v10 = vpop.f32.mrb[41].mxu1  ;;  %v5414_v23 = vld [vmem:[%s6870_s1] sm:$0xff]   ;;  %v5415_v24 = vld [vmem:[%s6870_s1 + $0x48] sm:$0xff]  }
 0x3f9   :  { %v2097_v29 = vpop.f32.mrb[42].mxu1  ;;  %v5417_v10 = vld [vmem:[%s6870_s1 + $0x50] sm:$0xff]  }
 0x3fa   :  { %v2177_v30 = vadd.f32 %v2171_v15, %v2100_v25  ;;  %v4848_v31 = vpop.f32.mrb[43].mxu1  ;;  %v2390_v15 = vrot.slane %v2388_v11, 1  ;;  %v5416_v25 = vld [vmem:[%s6870_s1 + $0x8] sm:$0xff]   ;;  %v5419_v29 = vld [vmem:[%s6870_s1 + $0x58] sm:$0xff]   ;;  %v5433_v11 = vld [vmem:[%s6870_s1 + $0x160] sm:$0xff]  }
 0x3fb   :  { %v5421_v31 = vld [vmem:[%s6870_s1 + $0x60] sm:$0xff]  }
 0x3fc   :  { %v2178_v33 = vadd.f32 %v2177_v30, %v160_v28  ;;  %v2391_v19 = vor.u32 %v2390_v15, %v2386_v14  ;;  %v5418_v28 = vld [vmem:[%s6870_s1 + $0x10] sm:$0xff]   ;;  %v5420_v30 = vld [vmem:[%s6870_s1 + $0x18] sm:$0xff]   ;;  %v5437_v14 = vld [vmem:[%s6870_s1 + $0x180] sm:$0xff]  }
 0x3fd   :  { %v5438_v15 = vld [vmem:[%s6870_s1 + $0x188] sm:$0xff]  }
 0x3fe   :  { %v4233_v34 = vmul.f32 -1.442695, %v2178_v33  ;;  %v2396_v22 = vsel %vm222_vm0, %v2391_v19, %v2395_v20  ;;  %v5441_v19 = vld [vmem:[%s6870_s1 + $0x1a0] sm:$0xff]  }
 0x400   :  { %5377 = vpow2.f32 %v4233_v34  ;;  %v5423_v34 = vld [vmem:[%s6870_s1 + $0x68] sm:$0xff]  }
 0x40a   :  { %v5378_v35 = vpop.eup %5377 }
 0x40b   :  { %v2182_v37 = vadd.f32 1.0, %v5378_v35  ;;  %v2435_v35 = vshrl.u32 %v4261_v7, 16 }
 0x40d   :  { %5379 = vrcp.f32 %v2182_v37  ;;  %v2433_v37 = vshrl.u32 %v4260_v9, 16 }
 0x417   :  { %v5380_v41 = vpop.eup %5379 }
 0x418   :  { %2186 = vrot.lane.b32.xlu1 %v5380_v41, %s5493_s11  ;;  %v5426_v41 = vld [vmem:[%s6870_s1 + $0x30] sm:$0xff]  }
 0x48a   :  { %v2187_v45 = vpop.permute.xlu1 %2186 }
 0x48b   :  { %v2189_v46 = vmul.f32 %v2187_v45, %v2178_v33  ;;  %v5422_v33 = vld [vmem:[%s6870_s1 + $0x20] sm:$0xff]   ;;  %v5430_v45 = vld [vmem:[%s6870_s1 + $0x1c8] sm:$0xff]  }
 0x48d   :  { %v2191_v47 = vpack.c.bf16 %v2189_v46, %v2189_v46  ;;  %v5431_v46 = vld [vmem:[%s6870_s1 + $0x1d0] sm:$0xff]  }
 0x48f   :  { %4870 = vmatmul.mubr.msk.bf16.vlgmr.msra.gmra.mrb[44].mxu1 %vm453_vm1, %v2191_v47  ;;  %v5432_v47 = vld [vmem:[%s6870_s1 + $0x1d8] sm:$0xff]  }
 0x490   :  { %4508 = vmatpush3.bf16.msra.mxu1 %v5398_v48  ;;  %2485 = vmatprep.mubr.bf16.mxu1 %v2408_v21  ;;  %v5303_v48 = vld [vmem:[%s6869_s0 + $0x30] ss:$16 sps:$4 sm:$0xfe]   ;;  %v2412_v21 = vshll.u32 %v6409_v18, 16 }
 0x491   :  { %4509 = vmatprep.subr.bf16.mxu1 %v5399_v49  ;;  %v5304_v49 = vld [vmem:[%s6869_s0 + $0x50] ss:$0 sps:$4 sm:$0x33]  }
 0x494   :  { %4510 = vmatpush3.bf16.msra.mxu1 %v5400_v50  ;;  %v2663_v50 = vrot.slane %v5303_v48, 1  ;;  %v5456_v48 = vld [vmem:[%s6870_s1 + $0xd8] sm:$0xff]  }
 0x495   :  { %4511 = vmatprep.subr.bf16.mxu1 %v5401_v51  ;;  %v2664_v51 = vrot.slane %v5304_v49, 1 }
 0x498   :  { %4512 = vmatpush3.bf16.msra.mxu1 %v5402_v52  ;;  %v2665_v52 = vsel %vm838_vm2, %v2663_v50, %v2664_v51 }
 0x499   :  { %4513 = vmatprep.subr.bf16.mxu1 %v5403_v53  ;;  %v6357_v53 = vld [vmem:[%s6869_s0 + $0x3c] ss:$16 sps:$4 sm:$0xff]  }
 0x49c   :  { %4514 = vmatpush3.bf16.msra.mxu1 %v5404_v54  ;;  %v4252_v54 = vld [vmem:[%s6869_s0 + $0x58] sm:$0x11] }
 0x49d   :  { %4515 = vmatprep.subr.bf16.mxu1 %v5405_v55  ;;  %v6362_v55 = vcombine.high %v4252_v54, %v4252_v54  ;;  %v4262_v20 = vcombine.low %v4252_v54, %v4252_v54 }
 0x4a0   :  { %4516 = vmatpush3.bf16.msra.mxu1 %v5406_v59  ;;  %v2424_v59 = vshll.u32 %v6357_v53, 16 }
 0x4a1   :  { %4517 = vmatprep.subr.bf16.mxu1 %v5407_v57  ;;  %v2422_v57 = vshrl.u32 %v6357_v53, 16 }
 0x4a4   :  { %4518 = vmatpush3.bf16.msra.mxu1 %v5408_v61  ;;  %v2426_v61 = vrot.slane %v2424_v59, 1 }
 0x4a5   :  { %4519 = vmatprep.subr.bf16.mxu1 %v5409_v62  ;;  %v2429_v62 = vshll.u32 %v6362_v55, 16 }
 0x4a8   :  { %4520 = vmatpush3.bf16.msra.mxu1 %v5410_v56  ;;  %v6370_v56 = vld [vmem:[%s6876_s7] sm:$0x1] }
 0x4a9   :  { %4521 = vmatprep.subr.bf16.mxu1 %v5411_v63  ;;  %v2427_v63 = vor.u32 %v2426_v61, %v2422_v57 }
 0x4ac   :  { %4522 = vmatpush3.bf16.msra.mxu1 %v5412_v58  ;;  %v2431_v58 = vrot.slane %v2429_v62, 1 }
 0x4ad   :  { %4535 = vmatprep.subr.bf16.mxu1 %v5413_v0 }
 0x4af   :  { %2486 = vmatmul.mubr.bf16.vlgmr.msra.gmra.mrb[48].mxu1 %v2396_v22  ;;  %v5442_v22 = vld [vmem:[%s6870_s1 + $0x1a8] sm:$0xff]  }
 0x4b0   :  { %4536 = vmatpush3.bf16.msra.mxu1 %v5414_v23  ;;  %2493 = vmatprep.mubr.bf16.mxu1 %v2435_v35  ;;  %v2410_v23 = vshrl.u32 %v6409_v18, 16  ;;  %v2437_v35 = vshrl.u32 %v4262_v20, 16 }
 0x4b1   :  { %4537 = vmatprep.subr.bf16.mxu1 %v5415_v24  ;;  %v2414_v24 = vrot.slane %v2412_v21, 1 }
 0x4b4   :  { %4538 = vmatpush3.bf16.msra.mxu1 %v5416_v25  ;;  %v2417_v25 = vshll.u32 %v4262_v20, 16 }
 0x4b5   :  { %4539 = vmatprep.subr.bf16.mxu1 %v5417_v10  ;;  %v5443_v10 = vld [vmem:[%s6870_s1 + $0x1b0] sm:$0xff]  }
 0x4b7   :  { %2494 = vmatmul.mubr.bf16.gmra.mrb[52].mxu1 %v2433_v37  ;;  %v5447_v37 = vld [vmem:[%s6870_s1 + $0x90] sm:$0xff]  }
 0x4b8   :  { %4540 = vmatpush3.bf16.msra.mxu1 %v5418_v28  ;;  %2591 = vmatprep.mubr.bf16.mxu1 %v5293_v3  ;;  %v2415_v28 = vor.u32 %v2414_v24, %v2410_v23 }
 0x4b9   :  { %4541 = vmatprep.subr.bf16.mxu1 %v5419_v29  ;;  %v2419_v29 = vrot.slane %v2417_v25, 1 }
 0x4bc   :  { %4542 = vmatpush3.bf16.msra.mxu1 %v5420_v30  ;;  %v5444_v30 = vld [vmem:[%s6870_s1 + $0x1b8] sm:$0xff]  }
 0x4bd   :  { %4543 = vmatprep.subr.bf16.mxu1 %v5421_v31  ;;  %v2420_v31 = vsel %vm222_vm0, %v2415_v28, %v2419_v29 }
 0x4c0   :  { %4544 = vmatpush3.bf16.msra.mxu1 %v5422_v33  ;;  %v2439_v33 = vshrl.u32 %v6362_v55, 16 }
 0x4c1   :  { %4545 = vmatprep.subr.bf16.mxu1 %v5423_v34  ;;  %v5445_v34 = vld [vmem:[%s6870_s1 + $0x80] sm:$0xff]  }
 0x4c4   :  { %4546 = vmatpush3.bf16.msra.mxu1 %v5424_v36  ;;  %v5446_v36 = vld [vmem:[%s6870_s1 + $0x88] sm:$0xff]  }
 0x4c5   :  { %4547 = vmatprep.subr.bf16.mxu1 %v5425_v38  ;;  %v5448_v38 = vld [vmem:[%s6870_s1 + $0x98] sm:$0xff]  }
 0x4c8   :  { %4548 = vmatpush3.bf16.msra.mxu1 %v5426_v41  ;;  %v5449_v41 = vld [vmem:[%s6870_s1 + $0xa0] sm:$0xff]  }
 0x4c9   :  { %4549 = vmatprep.subr.bf16.mxu1 %v5427_v26  ;;  %v5450_v26 = vld [vmem:[%s6870_s1 + $0xa8] sm:$0xff]  }
 0x4cc   :  { %4550 = vmatpush3.bf16.msra.mxu1 %v5428_v27  ;;  %v5451_v27 = vld [vmem:[%s6870_s1 + $0xb0] sm:$0xff]  }
 0x4cd   :  { %4893 = vmatprep.subr.bf16.mxu1 %v5429_v44 }
 0x4cf   :  { %2592 = vmatmul.mubr.bf16.vlgmr.msra.gmra.mrb[56].mxu1 %v5296_v5 }
 0x4d0   :  { %2599 = vmatprep.mubr.bf16.mxu1 %v4261_v7  ;;  %4894 = vmatpush3.bf16.msra.mxu1 %v5429_v44  ;;  %v5452_v44 = vld [vmem:[%s6870_s1 + $0xb8] sm:$0xff]  }
 0x4d1   :  { %4895 = vmatprep.subr.bf16.mxu1 %v5430_v45 }
 0x4d4   :  { %4896 = vmatpush3.bf16.msra.mxu1 %v5430_v45  ;;  %v5453_v45 = vld [vmem:[%s6870_s1 + $0xc0] sm:$0xff]  }
 0x4d5   :  { %4897 = vmatprep.subr.bf16.mxu1 %v5431_v46 }
 0x4d7   :  { %2600 = vmatmul.mubr.bf16.gmra.mrb[60].mxu1 %v4260_v9  ;;  %v2432_v9 = vsel %vm222_vm0, %v2427_v63, %v2431_v58 }
 0x4d8   :  { %4898 = vmatpush3.bf16.msra.mxu1 %v5431_v46  ;;  %4901 = vmatprep.mubr.msk.bf16.mxu1 %vm453_vm1, %v2665_v52  ;;  %v5454_v46 = vld [vmem:[%s6870_s1 + $0xc8] sm:$0xff]  }
 0x4d9   :  { %4899 = vmatprep.subr.bf16.mxu1 %v5432_v47 }
 0x4dc   :  { %4900 = vmatpush3.bf16.msra.mxu1 %v5432_v47  ;;  %v5455_v47 = vld [vmem:[%s6870_s1 + $0xd0] sm:$0xff]  }
 0x4dd   :  { %4905 = vmatprep.subr.bf16.mxu1 %v5492_v43 }
 0x4df   :  { %4902 = vmatmul.mubr.msk.bf16.vlgmr.msra.gmra.mrb[64].mxu1 %vm453_vm1, %v2664_v51 }
 0x4e0   :  { %4909 = vmatprep.mubr.msk.bf16.mxu1 %vm5494_vm3, %v5492_v43 }
 0x562   :  { %v2253_v0 = vpop.f32.mrb[44].mxu1 }
 0x563   :  { %v2254_v3 = vadd.f32 %v2253_v0, %v6370_v56  ;;  %v4871_v4 = vpop.f32.mrb[45].mxu1 }
 0x564   :  { %v2256_v5 = vpop.f32.mrb[46].mxu1 }
 0x565   :  { %v2259_v7 = vpack.c.bf16 %v2254_v3, %v2254_v3  ;;  %v4872_v8 = vpop.f32.mrb[47].mxu1 }
 0x567   :  { %4890 = vmatmul.mubr.bf16.vlgmr.msra.gmra.mrb[52].mxu0 %v2259_v7 }
 0x568   :  { %2502 = vmatpush1.bf16.msra.mxu0 %v5433_v11  ;;  %4264 = vmatprep.mubr.msk.bf16.mxu0 %vm453_vm1, %v2432_v9 }
 0x569   :  { %2503 = vmatprep.subr.bf16.mxu0 %v5491_v1 }
 0x56c   :  { %2504 = vmatpush1.bf16.msra.mxu0 %v5434_v6 }
 0x56d   :  { %2505 = vmatprep.subr.bf16.mxu0 %v5491_v1 }
 0x570   :  { %2506 = vmatpush1.bf16.msra.mxu0 %v5435_v12 }
 0x571   :  { %2507 = vmatprep.subr.bf16.mxu0 %v5491_v1 }
 0x574   :  { %2508 = vmatpush1.bf16.msra.mxu0 %v5436_v13 }
 0x575   :  { %2509 = vmatprep.subr.bf16.mxu0 %v5491_v1 }
 0x578   :  { %2510 = vmatpush1.bf16.msra.mxu0 %v5437_v14 }
 0x579   :  { %2511 = vmatprep.subr.bf16.mxu0 %v5491_v1 }
 0x57c   :  { %2512 = vmatpush1.bf16.msra.mxu0 %v5438_v15 }
 0x57d   :  { %2513 = vmatprep.subr.bf16.mxu0 %v5491_v1 }
 0x580   :  { %2514 = vmatpush1.bf16.msra.mxu0 %v5439_v16 }
 0x581   :  { %2515 = vmatprep.subr.bf16.mxu0 %v5491_v1 }
 0x582   :  { %v4523_v49 = vpop.f32.mrb[48].mxu1 }
 0x583   :  { %v4524_v50 = vpop.f32.mrb[49].mxu1 }
 0x584   :  { %2516 = vmatpush1.bf16.msra.mxu0 %v5440_v17  ;;  %v4525_v51 = vadd.f32 %v4524_v50, %v4523_v49  ;;  %v4526_v52 = vpop.f32.mrb[50].mxu1  ;;  %v6491_v17 = vld [vmem:[%s6878_s9] sm:$0x1] }
 0x585   :  { %2517 = vmatprep.subr.bf16.mxu0 %v5491_v1 }
 0x588   :  { %2518 = vmatpush1.bf16.msra.mxu0 %v5441_v19 }
 0x589   :  { %2519 = vmatprep.subr.bf16.mxu0 %v5491_v1 }
 0x58c   :  { %2520 = vmatpush1.bf16.msra.mxu0 %v5442_v22 }
 0x58d   :  { %2521 = vmatprep.subr.bf16.mxu0 %v5491_v1 }
 0x590   :  { %2522 = vmatpush1.bf16.msra.mxu0 %v5443_v10 }
 0x591   :  { %2523 = vmatprep.subr.bf16.mxu0 %v5491_v1 }
 0x594   :  { %2524 = vmatpush1.bf16.msra.mxu0 %v5444_v30 }
 0x595   :  { %2607 = vmatprep.subr.bf16.mxu0 %v5491_v1 }
 0x597   :  { %2534 = vmatmul.mubr.bf16.vlgmr.msra.gmra.mrb[56].mxu0 %v2420_v31 }
 0x598   :  { %2608 = vmatpush1.bf16.msra.mxu0 %v5445_v34  ;;  %4265 = vmatprep.mubr.msk.bf16.mxu0 %vm453_vm1, %v2439_v33 }
 0x599   :  { %2609 = vmatprep.subr.bf16.mxu0 %v5491_v1 }
 0x59c   :  { %2610 = vmatpush1.bf16.msra.mxu0 %v5446_v36 }
 0x59d   :  { %2611 = vmatprep.subr.bf16.mxu0 %v5491_v1 }
 0x59f   :  { %2542 = vmatmul.mubr.bf16.gmra.mrb[60].mxu0 %v2437_v35 }
 0x5a0   :  { %2612 = vmatpush1.bf16.msra.mxu0 %v5447_v37  ;;  %4266 = vmatprep.mubr.msk.bf16.mxu0 %vm453_vm1, %v6357_v53 }
 0x5a1   :  { %2613 = vmatprep.subr.bf16.mxu0 %v5491_v1 }
 0x5a4   :  { %2614 = vmatpush1.bf16.msra.mxu0 %v5448_v38  ;;  %v5457_v38 = vld [vmem:[%s6871_s2] ss:$0 sm:$0xff] }
 0x5a5   :  { %2615 = vmatprep.subr.bf16.mxu0 %v5491_v1 }
 0x5a8   :  { %2616 = vmatpush1.bf16.msra.mxu0 %v5449_v41 }
 0x5a9   :  { %2617 = vmatprep.subr.bf16.mxu0 %v5491_v1 }
 0x5ac   :  { %2618 = vmatpush1.bf16.msra.mxu0 %v5450_v26 }
 0x5ad   :  { %2619 = vmatprep.subr.bf16.mxu0 %v5491_v1 }
 0x5b0   :  { %2620 = vmatpush1.bf16.msra.mxu0 %v5451_v27 }
 0x5b1   :  { %2621 = vmatprep.subr.bf16.mxu0 %v5491_v1 }
 0x5b4   :  { %2622 = vmatpush1.bf16.msra.mxu0 %v5452_v44 }
 0x5b5   :  { %2623 = vmatprep.subr.bf16.mxu0 %v5491_v1 }
 0x5b8   :  { %2624 = vmatpush1.bf16.msra.mxu0 %v5453_v45 }
 0x5b9   :  { %2625 = vmatprep.subr.bf16.mxu0 %v5491_v1 }
 0x5bc   :  { %2626 = vmatpush1.bf16.msra.mxu0 %v5454_v46 }
 0x5bd   :  { %2627 = vmatprep.subr.bf16.mxu0 %v5491_v1 }
 0x5c0   :  { %2628 = vmatpush1.bf16.msra.mxu0 %v5455_v47 }
 0x5c1   :  { %2629 = vmatprep.subr.bf16.mxu0 %v5491_v1  ;;  %v4527_v1 = vpop.f32.mrb[51].mxu1 }
 0x5c2   :  { %v4528_v53 = vadd.f32 %v4527_v1, %v4526_v52  ;;  %v4529_v54 = vpop.f32.mrb[52].mxu1 }
 0x5c3   :  { %v4530_v59 = vpop.f32.mrb[53].mxu1 }
 0x5c4   :  { %2630 = vmatpush1.bf16.msra.mxu0 %v5456_v48  ;;  %v4531_v57 = vadd.f32 %v4530_v59, %v4529_v54  ;;  %v4532_v61 = vpop.f32.mrb[54].mxu1 }
 0x5c5   :  { %4937 = vmatprep.subr.bf16.mxu0 %v5492_v43  ;;  %v4533_v62 = vpop.f32.mrb[55].mxu1 }
 0x5c6   :  { %v4551_v63 = vpop.f32.mrb[56].mxu1 }
 0x5c7   :  { %2640 = vmatmul.mubr.bf16.vlgmr.msra.gmra.mrb[56].mxu0 %v6409_v18  ;;  %v4552_v58 = vpop.f32.mrb[57].mxu1 }
 0x5c8   :  { %4267 = vmatprep.mubr.msk.bf16.mxu0 %vm453_vm1, %v6362_v55  ;;  %v4553_v0 = vadd.f32 %v4552_v58, %v4551_v63  ;;  %v4554_v3 = vpop.f32.mrb[58].mxu1 }
 0x5c9   :  { %v4555_v55 = vpop.f32.mrb[59].mxu1 }
 0x5ca   :  { %v4556_v4 = vadd.f32 %v4555_v55, %v4554_v3  ;;  %v5129_v5 = vadd.f32 %v4553_v0, %v4525_v51  ;;  %v4557_v8 = vpop.f32.mrb[60].mxu1  ;;  %v5306_v0 = vld [vmem:[%s6873_s4 + $0x40] sm:$0xff]   ;;  %v5308_v55 = vld [vmem:[%s6873_s4 + $0x48] sm:$0xff]  }
 0x5cb   :  { %v4558_v9 = vpop.f32.mrb[61].mxu1  ;;  %4938 = vmatpush3.bf16.msra.mxu0 %v5306_v0 }
 0x5cc   :  { %v5131_v7 = vadd.f32 %v4556_v4, %v4528_v53  ;;  %v4559_v11 = vadd.f32 %v4558_v9, %v4557_v8  ;;  %v4560_v6 = vpop.f32.mrb[62].mxu1  ;;  %4939 = vmatprep.subr.bf16.mxu0 %v5492_v43  ;;  %v5310_v4 = vld [vmem:[%s6873_s4 + $0x50] sm:$0xff]  }
 0x5cd   :  { %v4561_v12 = vpop.f32.mrb[63].mxu1 }
 0x5ce   :  { %v4903_v13 = vpop.f32.mrb[64].mxu1 }
 0x5cf   :  { %2648 = vmatmul.mubr.bf16.gmra.mrb[64].mxu0 %v4262_v20  ;;  %v2706_v14 = vpop.f32.mrb[65].mxu1 }
 0x5d0   :  { %4945 = vmatprep.mubr.msk.bf16.mxu0 %vm5494_vm3, %v5492_v43  ;;  %v4904_v15 = vpop.f32.mrb[66].mxu1  ;;  %4940 = vmatpush3.bf16.msra.mxu0 %v5308_v55  ;;  %v5340_v55 = vld [vmem:[%s6873_s4 + $0x148] sm:$0xff]  }
 0x5d1   :  { %v2709_v16 = vpop.f32.mrb[67].mxu1  ;;  %4941 = vmatprep.subr.bf16.mxu0 %v5492_v43  ;;  %v5305_v15 = vld [vmem:[%s6873_s4 + $0x20] sm:$0xff]  }
 0x5d4   :  { %4942 = vmatpush3.bf16.msra.mxu0 %v5310_v4  ;;  %v5341_v4 = vld [vmem:[%s6873_s4 + $0xf0] sm:$0xff]  }
 0x5d5   :  { %4943 = vmatprep.subr.bf16.mxu0 %v5492_v43 }
 0x63a   :  { %v2342_v18 = vpop.f32.mrb[52].mxu0 }
 0x63b   :  { %v2343_v19 = vadd.f32 %v2342_v18, %v6491_v17  ;;  %v4891_v20 = vpop.f32.mrb[53].mxu0  ;;  %v5307_v18 = vld [vmem:[%s6873_s4 + $0x28] sm:$0xff]  }
 0x63c   :  { %v2345_v21 = vpop.f32.mrb[54].mxu0  ;;  %v5312_v20 = vld [vmem:[%s6873_s4 + $0x58] sm:$0xff]  }
 0x63d   :  { %2348 = vst [vmem:[#allocation2] sm:$0x1] %v2343_v19  ;;  %v4892_v22 = vpop.f32.mrb[55].mxu0  ;;  %v5311_v19 = vld [vmem:[%s6873_s4 + $0x38] sm:$0xff]   ;;  %4944 = vmatpush3.bf16.msra.mxu0 %v5312_v20  ;;  %v5354_v20 = vld [vmem:[%s6873_s4 + $0x1c0] sm:$0xff]  }
 0x63e   :  { %4961 = vmatprep.subr.bf16.mxu0 %v5492_v43 }
 0x672   :  { %v2543_v23 = vpop.f32.mrb[60].mxu0 }
 0x673   :  { %v2544_v24 = vadd.f32 %v4531_v57, %v2543_v23  ;;  %v2545_v25 = vpop.f32.mrb[61].mxu0 }
 0x674   :  { %v2546_v10 = vpop.f32.mrb[62].mxu0 }
 0x675   :  { %v2547_v28 = vpop.f32.mrb[63].mxu0  ;;  %v2602_v29 = vadd.f32 %v4559_v11, %v2544_v24  ;;  %v5313_v10 = vld [vmem:[%s6873_s4] sm:$0xff]  }
 0x676   :  { %v5314_v28 = vld [vmem:[%s6873_s4 + $0x80] sm:$0xff]  }
 0x69a   :  { %v2641_v30 = vpop.f32.mrb[56].mxu0 }
 0x69b   :  { %v5130_v31 = vadd.f32 %v5129_v5, %v2641_v30  ;;  %v2643_v33 = vpop.f32.mrb[57].mxu0 }
 0x69c   :  { %v2644_v34 = vpop.f32.mrb[58].mxu0  ;;  %v5316_v33 = vld [vmem:[%s6873_s4 + $0x88] sm:$0xff]  }
 0x69d   :  { %v5132_v35 = vadd.f32 %v5131_v7, %v2644_v34  ;;  %v2720_v36 = vadd.f32 %v5130_v31, %v2706_v14  ;;  %v2646_v37 = vpop.f32.mrb[59].mxu0  ;;  %v5315_v31 = vld [vmem:[%s6873_s4 + $0x8] sm:$0xff]   ;;  %v5317_v34 = vld [vmem:[%s6873_s4 + $0x10] sm:$0xff]  }
 0x69e   :  { %v5320_v37 = vld [vmem:[%s6873_s4 + $0x98] sm:$0xff]  }
 0x69f   :  { %v2723_v41 = vadd.f32 %v5457_v38, %v2720_v36  ;;  %v2721_v26 = vadd.f32 %v5132_v35, %v2709_v16  ;;  %v5458_v16 = vld [vmem:[%s6872_s3] sm:$0xff]   ;;  %v5318_v35 = vld [vmem:[%s6873_s4 + $0x90] sm:$0xff]   ;;  %v5319_v36 = vld [vmem:[%s6873_s4 + $0x18] sm:$0xff]  }
 0x6a1   :  { %v4272_v27 = vmul.f32 -1.442695, %v2723_v41  ;;  %v2724_v44 = vadd.f32 %v5457_v38, %v2721_v26 }
 0x6a2   :  { %v2649_v45 = vpop.f32.mrb[64].mxu0 }
 0x6a3   :  { %5381 = vpow2.f32 %v4272_v27  ;;  %v4273_v46 = vmul.f32 -1.442695, %v2724_v44  ;;  %v2650_v47 = vadd.f32 %v2649_v45, %v2602_v29  ;;  %v2651_v48 = vpop.f32.mrb[65].mxu0  ;;  %v5323_v27 = vld [vmem:[%s6873_s4 + $0x68] sm:$0xff]   ;;  %v5325_v45 = vld [vmem:[%s6873_s4 + $0x70] sm:$0xff]  }
 0x6a4   :  { %v2652_v49 = vpop.f32.mrb[66].mxu0  ;;  %v5328_v48 = vld [vmem:[%s6873_s4 + $0xd8] sm:$0xff]  }
 0x6a5   :  { %5383 = vpow2.f32 %v4273_v46  ;;  %v2722_v50 = vadd.f32 %v4903_v13, %v2650_v47  ;;  %v2653_v51 = vpop.f32.mrb[67].mxu0  ;;  %v5326_v46 = vld [vmem:[%s6873_s4 + $0xd0] sm:$0xff]   ;;  %v5327_v47 = vld [vmem:[%s6873_s4 + $0x78] sm:$0xff]   ;;  %v5329_v49 = vld [vmem:[%s6873_s4 + $0xa0] sm:$0xff]  }
 0x6a7   :  { %v2725_v52 = vadd.f32 %v5457_v38, %v2722_v50  ;;  %v5321_v38 = vld [vmem:[%s6873_s4 + $0x60] sm:$0xff]  }
 0x6a8   :  { %v5330_v50 = vld [vmem:[%s6873_s4 + $0x100] sm:$0xff]  }
 0x6a9   :  { %v4274_v1 = vmul.f32 -1.442695, %v2725_v52 }
 0x6ab   :  { %5385 = vpow2.f32 %v4274_v1  ;;  %v5331_v1 = vld [vmem:[%s6873_s4 + $0xa8] sm:$0xff]  }
 0x6ad   :  { %v5382_v53 = vpop.eup %5381 }
 0x6ae   :  { %v2735_v54 = vadd.f32 1.0, %v5382_v53  ;;  %v5332_v53 = vld [vmem:[%s6873_s4 + $0x108] sm:$0xff]  }
 0x6af   :  { %v5384_v59 = vpop.eup %5383 }
 0x6b0   :  { %5387 = vrcp.f32 %v2735_v54  ;;  %v2736_v57 = vadd.f32 1.0, %v5384_v59  ;;  %v5333_v54 = vld [vmem:[%s6873_s4 + $0xb0] sm:$0xff]  }
 0x6b1   :  { %v5334_v59 = vld [vmem:[%s6873_s4 + $0x110] sm:$0xff]  }
 0x6b2   :  { %5389 = vrcp.f32 %v2736_v57  ;;  %v5335_v57 = vld [vmem:[%s6873_s4 + $0xb8] sm:$0xff]  }
 0x6b5   :  { %v5386_v61 = vpop.eup %5385 }
 0x6b6   :  { %v2737_v62 = vadd.f32 1.0, %v5386_v61  ;;  %v5336_v61 = vld [vmem:[%s6873_s4 + $0x118] sm:$0xff]  }
 0x6b8   :  { %5391 = vrcp.f32 %v2737_v62  ;;  %v5337_v62 = vld [vmem:[%s6873_s4 + $0xe0] sm:$0xff]  }
 0x6ba   :  { %v5388_v63 = vpop.eup %5387 }
 0x6bb   :  { %2747 = vrot.lane.b32.xlu0 %v5388_v63, %s5493_s11  ;;  %v5338_v63 = vld [vmem:[%s6873_s4 + $0x140] sm:$0xff]  }
 0x6bc   :  { %v5390_v58 = vpop.eup %5389 }
 0x6bd   :  { %2749 = vrot.lane.b32.xlu1 %v5390_v58, %s5493_s11 }
 0x6c2   :  { %v5392_v3 = vpop.eup %5391 }
 0x6c3   :  { %2751 = vrot.lane.b32.xlu0 %v5392_v3, %s5493_s11  ;;  %v5339_v3 = vld [vmem:[%s6873_s4 + $0xe8] sm:$0xff]  }
 0x72d   :  { %v2748_v5 = vpop.permute.xlu0 %2747 }
 0x72e   :  { %v2756_v8 = vmul.f32 %v2748_v5, %v2723_v41  ;;  %v5322_v41 = vld [vmem:[%s6873_s4 + $0xc0] sm:$0xff]   ;;  %v5342_v5 = vld [vmem:[%s6873_s4 + $0x150] sm:$0xff]  }
 0x72f   :  { %v2750_v7 = vpop.permute.xlu1 %2749 }
 0x730   :  { %v2757_v9 = vmul.f32 %v2750_v7, %v2724_v44  ;;  %v5324_v44 = vld [vmem:[%s6873_s4 + $0xc8] sm:$0xff]   ;;  %v5343_v7 = vld [vmem:[%s6873_s4 + $0xf8] sm:$0xff]  }
 0x732   :  { %v2759_v11 = vpack.c.bf16 %v2757_v9, %v2756_v8  ;;  %v5344_v8 = vld [vmem:[%s6873_s4 + $0x158] sm:$0xff]   ;;  %v5345_v9 = vld [vmem:[%s6873_s4 + $0x120] sm:$0xff]  }
 0x734   :  { %4906 = vmatpush3.bf16.msra.mxu1 %v2759_v11  ;;  %v5346_v11 = vld [vmem:[%s6873_s4 + $0x180] sm:$0xff]  }
 0x735   :  { %v2752_v6 = vpop.permute.xlu0 %2751  ;;  %4907 = vmatprep.subr.bf16.mxu1 %v5492_v43 }
 0x736   :  { %v2758_v12 = vmul.f32 %v2752_v6, %v2725_v52 }
 0x738   :  { %v2760_v13 = vpack.c.bf16 %v2758_v12, %v2758_v12 }
 0x73a   :  { %v2762_v14 = vand.u32 %v2760_v13, %v5852_v60  ;;  %v5309_v60 = vld [vmem:[%s6873_s4 + $0x30] sm:$0xff]   ;;  %v5347_v13 = vld [vmem:[%s6873_s4 + $0x128] sm:$0xff]  }
 0x73c   :  { %4908 = vmatpush3.bf16.msra.mxu1 %v2762_v14  ;;  %v5348_v14 = vld [vmem:[%s6873_s4 + $0x188] sm:$0xff]  }
 0x73d   :  { %4913 = vmatprep.subr.bf16.mxu1 %v5492_v43 }
 0x73f   :  { %4910 = vmatmul.mubr.msk.bf16.vlgmr.msra.gmra.mrb[68].mxu1 %vm972_vm5, %v5458_v16  ;;  %v5350_v16 = vld [vmem:[%s6873_s4 + $0x190] sm:$0xff]  }
 0x740   :  { %4914 = vmatpush3.bf16.msra.mxu1 %v5305_v15  ;;  %4921 = vmatprep.mubr.msk.bf16.mxu1 %vm5494_vm3, %v5492_v43  ;;  %v5349_v15 = vld [vmem:[%s6873_s4 + $0x130] sm:$0xff]  }
 0x741   :  { %4915 = vmatprep.subr.bf16.mxu1 %v5492_v43 }
 0x744   :  { %4916 = vmatpush3.bf16.msra.mxu1 %v5307_v18  ;;  %v5351_v18 = vld [vmem:[%s6873_s4 + $0x138] sm:$0xff]  }
 0x745   :  { %4917 = vmatprep.subr.bf16.mxu1 %v5492_v43 }
 0x748   :  { %4918 = vmatpush3.bf16.msra.mxu1 %v5309_v60  ;;  %v5352_v60 = vld [vmem:[%s6873_s4 + $0x198] sm:$0xff]  }
 0x749   :  { %4919 = vmatprep.subr.bf16.mxu1 %v5492_v43 }
 0x74c   :  { %4920 = vmatpush3.bf16.msra.mxu1 %v5311_v19  ;;  %v5353_v19 = vld [vmem:[%s6873_s4 + $0x160] sm:$0xff]  }
 0x74d   :  { %4925 = vmatprep.subr.bf16.mxu1 %v5492_v43 }
 0x812   :  { %v2798_v21 = vpop.f32.mrb[68].mxu1 }
 0x813   :  { %v4911_v22 = vpop.f32.mrb[69].mxu1 }
 0x814   :  { %v2801_v23 = vpop.f32.mrb[70].mxu1 }
 0x815   :  { %v6541_v24 = vpack.c.bf16 %v2801_v23, %v2798_v21  ;;  %v4912_v25 = vpop.f32.mrb[71].mxu1  ;;  %v5355_v23 = vld [vmem:[%s6873_s4 + $0x168] sm:$0xff]  }
 0x816   :  { %v5356_v25 = vld [vmem:[%s6873_s4 + $0x1c8] sm:$0xff]  }
 0x817   :  { %v6550_v29 = vshrl.u32 %v6541_v24, 16  ;;  %v2967_v30 = vrot.slane %v6541_v24, 1  ;;  %v3121_v26 = vrot.slane %v6541_v24, 2  ;;  %v3275_v52 = vrot.slane %v6541_v24, 3 }
 0x818   :  { %v3429_v0 = vrot.slane %v6541_v24, 4  ;;  %v3583_v12 = vrot.slane %v6541_v24, 5  ;;  %v3737_v22 = vrot.slane %v6541_v24, 6 }
 0x819   :  { %4922 = vmatmul.mubr.msk.bf16.vlgmr.msra.gmra.mrb[72].mxu1 %vm453_vm1, %v6550_v29  ;;  %4946 = vmatmul.mubr.msk.bf16.vlgmr.msra.gmra.mrb[68].mxu0 %vm453_vm1, %v2967_v30  ;;  %v3044_v51 = vrot.slane %v6550_v29, 1  ;;  %v3198_v58 = vrot.slane %v6550_v29, 2  ;;  %v3352_v6 = vrot.slane %v6550_v29, 3  ;;  %v3506_v21 = vrot.slane %v6550_v29, 4  ;;  %v5359_v30 = vld [vmem:[%s6873_s4 + $0x178] sm:$0xff]  }
 0x81a   :  { %4926 = vmatpush3.bf16.msra.mxu1 %v5313_v10  ;;  %4962 = vmatpush3.bf16.msra.mxu0 %v5314_v28  ;;  %v5357_v10 = vld [vmem:[%s6873_s4 + $0x170] sm:$0xff]  }
 0x81b   :  { %4927 = vmatprep.subr.bf16.mxu1 %v5492_v43  ;;  %4963 = vmatprep.subr.bf16.mxu0 %v5492_v43  ;;  %v5358_v28 = vld [vmem:[%s6873_s4 + $0x1d0] sm:$0xff]  }
 0x81c   :  { %4933 = vmatprep.mubr.msk.bf16.mxu1 %vm5494_vm3, %v5492_v43  ;;  %4969 = vmatprep.mubr.msk.bf16.mxu0 %vm5494_vm3, %v5492_v43 }
 0x81e   :  { %4928 = vmatpush3.bf16.msra.mxu1 %v5315_v31  ;;  %4964 = vmatpush3.bf16.msra.mxu0 %v5316_v33  ;;  %v5360_v31 = vld [vmem:[%s6873_s4 + $0x1d8] sm:$0xff]   ;;  %v5361_v33 = vld [vmem:[%s6873_s4 + $0x1a0] sm:$0xff]  }
 0x81f   :  { %4929 = vmatprep.subr.bf16.mxu1 %v5492_v43  ;;  %4965 = vmatprep.subr.bf16.mxu0 %v5492_v43 }
 0x822   :  { %4930 = vmatpush3.bf16.msra.mxu1 %v5317_v34  ;;  %4966 = vmatpush3.bf16.msra.mxu0 %v5318_v35  ;;  %v3660_v34 = vrot.slane %v6550_v29, 5  ;;  %v3891_v35 = vrot.slane %v6541_v24, 7 }
 0x823   :  { %4931 = vmatprep.subr.bf16.mxu1 %v5492_v43  ;;  %4967 = vmatprep.subr.bf16.mxu0 %v5492_v43 }
 0x826   :  { %4932 = vmatpush3.bf16.msra.mxu1 %v5319_v36  ;;  %4968 = vmatpush3.bf16.msra.mxu0 %v5320_v37  ;;  %v5362_v36 = vld [vmem:[%s6873_s4 + $0x1a8] sm:$0xff]   ;;  %v3814_v37 = vrot.slane %v6550_v29, 6 }
 0x827   :  { %4949 = vmatprep.subr.bf16.mxu1 %v5492_v43  ;;  %4985 = vmatprep.subr.bf16.mxu0 %v5492_v43  ;;  %v5462_v29 = vld [vmem:[%s6877_s8 + $0x28] sm:$0xff]  }
 0x829   :  { %4934 = vmatmul.mubr.msk.bf16.vlgmr.msra.gmra.mrb[76].mxu1 %vm453_vm1, %v6541_v24  ;;  %4970 = vmatmul.mubr.msk.bf16.vlgmr.msra.gmra.mrb[72].mxu0 %vm453_vm1, %v3121_v26  ;;  %v5363_v24 = vld [vmem:[%s6873_s4 + $0x1b0] sm:$0xff]   ;;  %v5465_v26 = vld [vmem:[%s6875_s6 + $0x18] sm:$0xff]  }
 0x82a   :  { %4950 = vmatpush3.bf16.msra.mxu1 %v5321_v38  ;;  %4986 = vmatpush3.bf16.msra.mxu0 %v5322_v41  ;;  %v5463_v38 = vld [vmem:[%s6875_s6 + $0x10] sm:$0xff]  }
 0x82b   :  { %4951 = vmatprep.subr.bf16.mxu1 %v5492_v43  ;;  %4987 = vmatprep.subr.bf16.mxu0 %v5492_v43  ;;  %v5464_v41 = vld [vmem:[%s6877_s8 + $0x30] sm:$0xff]  }
 0x82c   :  { %4957 = vmatprep.mubr.msk.bf16.mxu1 %vm5494_vm3, %v5492_v43  ;;  %4993 = vmatprep.mubr.msk.bf16.mxu0 %vm5494_vm3, %v5492_v43 }
 0x82e   :  { %4952 = vmatpush3.bf16.msra.mxu1 %v5323_v27  ;;  %4988 = vmatpush3.bf16.msra.mxu0 %v5324_v44 }
 0x82f   :  { %4953 = vmatprep.subr.bf16.mxu1 %v5492_v43  ;;  %4989 = vmatprep.subr.bf16.mxu0 %v5492_v43 }
 0x832   :  { %4954 = vmatpush3.bf16.msra.mxu1 %v5325_v45  ;;  %4990 = vmatpush3.bf16.msra.mxu0 %v5326_v46 }
 0x833   :  { %4955 = vmatprep.subr.bf16.mxu1 %v5492_v43  ;;  %4991 = vmatprep.subr.bf16.mxu0 %v5492_v43 }
 0x836   :  { %4956 = vmatpush3.bf16.msra.mxu1 %v5327_v47  ;;  %4992 = vmatpush3.bf16.msra.mxu0 %v5328_v48 }
 0x837   :  { %4973 = vmatprep.subr.bf16.mxu1 %v5492_v43  ;;  %5009 = vmatprep.subr.bf16.mxu0 %v5492_v43 }
 0x839   :  { %4958 = vmatmul.mubr.msk.bf16.vlgmr.msra.gmra.mrb[80].mxu1 %vm453_vm1, %v3044_v51  ;;  %4994 = vmatmul.mubr.msk.bf16.vlgmr.msra.gmra.mrb[76].mxu0 %vm453_vm1, %v3275_v52 }
 0x83a   :  { %4974 = vmatpush3.bf16.msra.mxu1 %v5329_v49  ;;  %5010 = vmatpush3.bf16.msra.mxu0 %v5330_v50 }
 0x83b   :  { %4975 = vmatprep.subr.bf16.mxu1 %v5492_v43  ;;  %5011 = vmatprep.subr.bf16.mxu0 %v5492_v43 }
 0x83c   :  { %4981 = vmatprep.mubr.msk.bf16.mxu1 %vm5494_vm3, %v5492_v43  ;;  %5017 = vmatprep.mubr.msk.bf16.mxu0 %vm5494_vm3, %v5492_v43 }
 0x83e   :  { %4976 = vmatpush3.bf16.msra.mxu1 %v5331_v1  ;;  %5012 = vmatpush3.bf16.msra.mxu0 %v5332_v53 }
 0x83f   :  { %4977 = vmatprep.subr.bf16.mxu1 %v5492_v43  ;;  %5013 = vmatprep.subr.bf16.mxu0 %v5492_v43 }
 0x842   :  { %4978 = vmatpush3.bf16.msra.mxu1 %v5333_v54  ;;  %5014 = vmatpush3.bf16.msra.mxu0 %v5334_v59 }
 0x843   :  { %4979 = vmatprep.subr.bf16.mxu1 %v5492_v43  ;;  %5015 = vmatprep.subr.bf16.mxu0 %v5492_v43 }
 0x846   :  { %4980 = vmatpush3.bf16.msra.mxu1 %v5335_v57  ;;  %5016 = vmatpush3.bf16.msra.mxu0 %v5336_v61 }
 0x847   :  { %4997 = vmatprep.subr.bf16.mxu1 %v5492_v43  ;;  %5033 = vmatprep.subr.bf16.mxu0 %v5492_v43 }
 0x849   :  { %4982 = vmatmul.mubr.msk.bf16.vlgmr.msra.gmra.mrb[84].mxu1 %vm453_vm1, %v3198_v58  ;;  %5018 = vmatmul.mubr.msk.bf16.vlgmr.msra.gmra.mrb[80].mxu0 %vm453_vm1, %v3429_v0 }
 0x84a   :  { %4998 = vmatpush3.bf16.msra.mxu1 %v5337_v62  ;;  %5034 = vmatpush3.bf16.msra.mxu0 %v5338_v63 }
 0x84b   :  { %4999 = vmatprep.subr.bf16.mxu1 %v5492_v43  ;;  %5035 = vmatprep.subr.bf16.mxu0 %v5492_v43 }
 0x84c   :  { %5005 = vmatprep.mubr.msk.bf16.mxu1 %vm5494_vm3, %v5492_v43  ;;  %5041 = vmatprep.mubr.msk.bf16.mxu0 %vm5494_vm3, %v5492_v43 }
 0x84e   :  { %5000 = vmatpush3.bf16.msra.mxu1 %v5339_v3  ;;  %5036 = vmatpush3.bf16.msra.mxu0 %v5340_v55 }
 0x84f   :  { %5001 = vmatprep.subr.bf16.mxu1 %v5492_v43  ;;  %5037 = vmatprep.subr.bf16.mxu0 %v5492_v43 }
 0x852   :  { %5002 = vmatpush3.bf16.msra.mxu1 %v5341_v4  ;;  %5038 = vmatpush3.bf16.msra.mxu0 %v5342_v5 }
 0x853   :  { %5003 = vmatprep.subr.bf16.mxu1 %v5492_v43  ;;  %5039 = vmatprep.subr.bf16.mxu0 %v5492_v43 }
 0x856   :  { %5004 = vmatpush3.bf16.msra.mxu1 %v5343_v7  ;;  %5040 = vmatpush3.bf16.msra.mxu0 %v5344_v8 }
 0x857   :  { %5021 = vmatprep.subr.bf16.mxu1 %v5492_v43  ;;  %5057 = vmatprep.subr.bf16.mxu0 %v5492_v43 }
 0x859   :  { %5006 = vmatmul.mubr.msk.bf16.vlgmr.msra.gmra.mrb[88].mxu1 %vm453_vm1, %v3352_v6  ;;  %5042 = vmatmul.mubr.msk.bf16.vlgmr.msra.gmra.mrb[84].mxu0 %vm453_vm1, %v3583_v12 }
 0x85a   :  { %5022 = vmatpush3.bf16.msra.mxu1 %v5345_v9  ;;  %5058 = vmatpush3.bf16.msra.mxu0 %v5346_v11 }
 0x85b   :  { %5023 = vmatprep.subr.bf16.mxu1 %v5492_v43  ;;  %5059 = vmatprep.subr.bf16.mxu0 %v5492_v43 }
 0x85c   :  { %5029 = vmatprep.mubr.msk.bf16.mxu1 %vm5494_vm3, %v5492_v43  ;;  %5065 = vmatprep.mubr.msk.bf16.mxu0 %vm5494_vm3, %v5492_v43 }
 0x85e   :  { %5024 = vmatpush3.bf16.msra.mxu1 %v5347_v13  ;;  %5060 = vmatpush3.bf16.msra.mxu0 %v5348_v14 }
 0x85f   :  { %5025 = vmatprep.subr.bf16.mxu1 %v5492_v43  ;;  %5061 = vmatprep.subr.bf16.mxu0 %v5492_v43 }
 0x862   :  { %5026 = vmatpush3.bf16.msra.mxu1 %v5349_v15  ;;  %5062 = vmatpush3.bf16.msra.mxu0 %v5350_v16 }
 0x863   :  { %5027 = vmatprep.subr.bf16.mxu1 %v5492_v43  ;;  %5063 = vmatprep.subr.bf16.mxu0 %v5492_v43 }
 0x866   :  { %5028 = vmatpush3.bf16.msra.mxu1 %v5351_v18  ;;  %5064 = vmatpush3.bf16.msra.mxu0 %v5352_v60 }
 0x867   :  { %5045 = vmatprep.subr.bf16.mxu1 %v5492_v43  ;;  %5081 = vmatprep.subr.bf16.mxu0 %v5492_v43 }
 0x869   :  { %5030 = vmatmul.mubr.msk.bf16.vlgmr.msra.gmra.mrb[92].mxu1 %vm453_vm1, %v3506_v21  ;;  %5066 = vmatmul.mubr.msk.bf16.vlgmr.msra.gmra.mrb[88].mxu0 %vm453_vm1, %v3737_v22 }
 0x86a   :  { %5046 = vmatpush3.bf16.msra.mxu1 %v5353_v19  ;;  %5082 = vmatpush3.bf16.msra.mxu0 %v5354_v20 }
 0x86b   :  { %5047 = vmatprep.subr.bf16.mxu1 %v5492_v43  ;;  %5083 = vmatprep.subr.bf16.mxu0 %v5492_v43 }
 0x86c   :  { %5053 = vmatprep.mubr.msk.bf16.mxu1 %vm5494_vm3, %v5492_v43  ;;  %5089 = vmatprep.mubr.msk.bf16.mxu0 %vm5494_vm3, %v5492_v43 }
 0x86e   :  { %5048 = vmatpush3.bf16.msra.mxu1 %v5355_v23  ;;  %5084 = vmatpush3.bf16.msra.mxu0 %v5356_v25 }
 0x86f   :  { %5049 = vmatprep.subr.bf16.mxu1 %v5492_v43  ;;  %5085 = vmatprep.subr.bf16.mxu0 %v5492_v43 }
 0x872   :  { %5050 = vmatpush3.bf16.msra.mxu1 %v5357_v10  ;;  %5086 = vmatpush3.bf16.msra.mxu0 %v5358_v28 }
 0x873   :  { %5051 = vmatprep.subr.bf16.mxu1 %v5492_v43  ;;  %5087 = vmatprep.subr.bf16.mxu0 %v5492_v43 }
 0x876   :  { %5052 = vmatpush3.bf16.msra.mxu1 %v5359_v30  ;;  %5088 = vmatpush3.bf16.msra.mxu0 %v5360_v31 }
 0x877   :  { %5069 = vmatprep.subr.bf16.mxu1 %v5492_v43  ;;  %5105 = vmatprep.subr.bf16.mxu0 %v5492_v43 }
 0x879   :  { %5054 = vmatmul.mubr.msk.bf16.vlgmr.msra.gmra.mrb[96].mxu1 %vm453_vm1, %v3660_v34  ;;  %5090 = vmatmul.mubr.msk.bf16.vlgmr.msra.gmra.mrb[92].mxu0 %vm453_vm1, %v3891_v35 }
 0x87a   :  { %5070 = vmatpush3.bf16.msra.mxu1 %v5361_v33  ;;  %5077 = vmatprep.mubr.msk.bf16.mxu1 %vm5494_vm3, %v5492_v43 }
 0x87b   :  { %5071 = vmatprep.subr.bf16.mxu1 %v5492_v43  ;;  %5106 = vmatpush3.bf16.msra.mxu0 %v6180_v39  ;;  %v5364_v39 = vld [vmem:[%s6873_s4 + $0x1b8] sm:$0xff]  }
 0x87c   :  { %5107 = vmatprep.subr.bf16.mxu0 %v5492_v43  ;;  %5121 = vmatprep.mubr.msk.bf16.mxu0 %vm5494_vm3, %v5492_v43 }
 0x87e   :  { %5072 = vmatpush3.bf16.msra.mxu1 %v5362_v36 }
 0x87f   :  { %5073 = vmatprep.subr.bf16.mxu1 %v5492_v43  ;;  %5108 = vmatpush3.bf16.msra.mxu0 %v6186_v40  ;;  %v5459_v40 = vld [vmem:[%s6875_s6] sm:$0xff]  }
 0x880   :  { %5109 = vmatprep.subr.bf16.mxu0 %v5492_v43 }
 0x882   :  { %5074 = vmatpush3.bf16.msra.mxu1 %v5363_v24 }
 0x883   :  { %5075 = vmatprep.subr.bf16.mxu1 %v5492_v43  ;;  %5110 = vmatpush3.bf16.msra.mxu0 %v6193_v32  ;;  %v5460_v32 = vld [vmem:[%s6877_s8 + $0x20] sm:$0xff]  }
 0x884   :  { %5111 = vmatprep.subr.bf16.mxu0 %v5492_v43 }
 0x886   :  { %5076 = vmatpush3.bf16.msra.mxu1 %v5364_v39 }
 0x887   :  { %5093 = vmatprep.subr.bf16.mxu1 %v5492_v43  ;;  %5112 = vmatpush3.bf16.msra.mxu0 %v6201_v42  ;;  %v5461_v42 = vld [vmem:[%s6875_s6 + $0x8] sm:$0xff]  }
 0x888   :  { %5113 = vmatprep.subr.bf16.mxu0 %v5492_v43 }
 0x889   :  { %5078 = vmatmul.mubr.msk.bf16.vlgmr.msra.gmra.mrb[100].mxu1 %vm453_vm1, %v3814_v37 }
 0x88a   :  { %5094 = vmatpush3.bf16.msra.mxu1 %v5459_v40  ;;  %5101 = vmatprep.mubr.msk.bf16.mxu1 %vm5494_vm3, %v5492_v43 }
 0x88b   :  { %5095 = vmatprep.subr.bf16.mxu1 %v5492_v43  ;;  %5114 = vmatpush3.bf16.msra.mxu0 %v5460_v32 }
 0x88c   :  { %5115 = vmatprep.subr.bf16.mxu0 %v5492_v43 }
 0x88e   :  { %5096 = vmatpush3.bf16.msra.mxu1 %v5461_v42 }
 0x88f   :  { %5097 = vmatprep.subr.bf16.mxu1 %v5492_v43  ;;  %5116 = vmatpush3.bf16.msra.mxu0 %v5462_v29 }
 0x890   :  { %5117 = vmatprep.subr.bf16.mxu0 %v5492_v43 }
 0x892   :  { %5098 = vmatpush3.bf16.msra.mxu1 %v5463_v38 }
 0x893   :  { %5099 = vmatprep.subr.bf16.mxu1 %v5492_v43  ;;  %5118 = vmatpush3.bf16.msra.mxu0 %v5464_v41 }
 0x894   :  { %5119 = vmatprep.subr.bf16.mxu0 %v5492_v43 }
 0x896   :  { %5100 = vmatpush3.bf16.msra.mxu1 %v5465_v26 }
 0x897   :  { %5120 = vmatpush3.bf16.msra.mxu0 %v6270_v2 }
 0x8ec   :  { %v2886_v27 = vpop.f32.mrb[72].mxu1  ;;  %v3029_v44 = vpop.f32.mrb[68].mxu0 }
 0x8ed   :  { %v4923_v45 = vpop.f32.mrb[73].mxu1  ;;  %v4947_v46 = vpop.f32.mrb[69].mxu0 }
 0x8ee   :  { %v2889_v47 = vpop.f32.mrb[74].mxu1  ;;  %v3032_v48 = vpop.f32.mrb[70].mxu0 }
 0x8ef   :  { %v4924_v49 = vpop.f32.mrb[75].mxu1  ;;  %v4948_v50 = vpop.f32.mrb[71].mxu0 }
 0x8fc   :  { %v2952_v51 = vpop.f32.mrb[76].mxu1  ;;  %v3183_v52 = vpop.f32.mrb[72].mxu0 }
 0x8fd   :  { %v2953_v1 = vadd.f32 %v2952_v51, %v2886_v27  ;;  %v4935_v53 = vpop.f32.mrb[77].mxu1  ;;  %v4971_v43 = vpop.f32.mrb[73].mxu0 }
 0x8fe   :  { %v2955_v54 = vpop.f32.mrb[78].mxu1  ;;  %v3186_v59 = vpop.f32.mrb[74].mxu0  ;;  %v5466_v43 = vld [vmem:[%s6874_s5] sm:$0x1]  ;;  %s5495_s5 = smov [#allocation2]  }
 0x8ff   :  { %v4936_v57 = vpop.f32.mrb[79].mxu1  ;;  %v4972_v61 = vpop.f32.mrb[75].mxu0  ;;  %v3035_v62 = vadd.f32 %v3029_v44, %v2953_v1  ;;  %s4065_s19 = sshll.u32 %s5495_s5, 4  ;;  %s4066_s19 = int_to_ptr.vmem [resolvable:$true] %s4065_s19 }
 0x900   :  { %p5472_p1 = scmp.lt.s32.totalorder %s4066_s19, %s4066_s19 }
 0x90c   :  { %v3106_v63 = vpop.f32.mrb[80].mxu1  ;;  %v3337_v2 = vpop.f32.mrb[76].mxu0 }
 0x90d   :  { %v3112_v58 = vadd.f32 %v3106_v63, %v3035_v62  ;;  %v4959_v0 = vpop.f32.mrb[81].mxu1  ;;  %v4995_v3 = vpop.f32.mrb[77].mxu0 }
 0x90e   :  { %v3109_v55 = vpop.f32.mrb[82].mxu1  ;;  %v3340_v4 = vpop.f32.mrb[78].mxu0 }
 0x90f   :  { %v4960_v5 = vpop.f32.mrb[83].mxu1  ;;  %v4996_v7 = vpop.f32.mrb[79].mxu0  ;;  %v3189_v8 = vadd.f32 %v3183_v52, %v3112_v58 }
 0x91c   :  { %v3260_v9 = vpop.f32.mrb[84].mxu1  ;;  %v3491_v11 = vpop.f32.mrb[80].mxu0 }
 0x91d   :  { %v3266_v6 = vadd.f32 %v3260_v9, %v3189_v8  ;;  %v4983_v12 = vpop.f32.mrb[85].mxu1  ;;  %v5019_v13 = vpop.f32.mrb[81].mxu0 }
 0x91e   :  { %v3263_v14 = vpop.f32.mrb[86].mxu1  ;;  %v3494_v15 = vpop.f32.mrb[82].mxu0 }
 0x91f   :  { %v4984_v16 = vpop.f32.mrb[87].mxu1  ;;  %v5020_v18 = vpop.f32.mrb[83].mxu0  ;;  %v3343_v60 = vadd.f32 %v3337_v2, %v3266_v6 }
 0x92c   :  { %v3414_v19 = vpop.f32.mrb[88].mxu1  ;;  %v3645_v20 = vpop.f32.mrb[84].mxu0 }
 0x92d   :  { %v3420_v21 = vadd.f32 %v3414_v19, %v3343_v60  ;;  %v5007_v22 = vpop.f32.mrb[89].mxu1  ;;  %v5043_v23 = vpop.f32.mrb[85].mxu0 }
 0x92e   :  { %v3417_v25 = vpop.f32.mrb[90].mxu1  ;;  %v3648_v10 = vpop.f32.mrb[86].mxu0 }
 0x92f   :  { %v5008_v28 = vpop.f32.mrb[91].mxu1  ;;  %v5044_v30 = vpop.f32.mrb[87].mxu0  ;;  %v3497_v31 = vadd.f32 %v3491_v11, %v3420_v21 }
 0x93c   :  { %v3568_v33 = vpop.f32.mrb[92].mxu1  ;;  %v3799_v34 = vpop.f32.mrb[88].mxu0 }
 0x93d   :  { %v3574_v35 = vadd.f32 %v3568_v33, %v3497_v31  ;;  %v5031_v36 = vpop.f32.mrb[93].mxu1  ;;  %v5067_v24 = vpop.f32.mrb[89].mxu0 }
 0x93e   :  { %v3571_v39 = vpop.f32.mrb[94].mxu1  ;;  %v3802_v37 = vpop.f32.mrb[90].mxu0 }
 0x93f   :  { %v5032_v40 = vpop.f32.mrb[95].mxu1  ;;  %v5068_v32 = vpop.f32.mrb[91].mxu0  ;;  %v3651_v42 = vadd.f32 %v3645_v20, %v3574_v35 }
 0x94c   :  { %v3722_v29 = vpop.f32.mrb[96].mxu1  ;;  %v3953_v38 = vpop.f32.mrb[92].mxu0 }
 0x94d   :  { %v3728_v41 = vadd.f32 %v3722_v29, %v3651_v42  ;;  %v5055_v26 = vpop.f32.mrb[97].mxu1  ;;  %v5091_v27 = vpop.f32.mrb[93].mxu0 }
 0x94e   :  { %v3725_v44 = vpop.f32.mrb[98].mxu1  ;;  %v3956_v45 = vpop.f32.mrb[94].mxu0 }
 0x94f   :  { %v5056_v46 = vpop.f32.mrb[99].mxu1  ;;  %v5092_v47 = vpop.f32.mrb[95].mxu0  ;;  %v3805_v48 = vadd.f32 %v3799_v34, %v3728_v41 }
 0x95c   :  { %v3876_v49 = vpop.f32.mrb[100].mxu1 }
 0x95d   :  { %v3882_v50 = vadd.f32 %v3876_v49, %v3805_v48  ;;  %v5079_v51 = vpop.f32.mrb[101].mxu1 }
 0x95e   :  { %v3879_v52 = vpop.f32.mrb[102].mxu1 }
 0x95f   :  { %v3959_v1 = vadd.f32 %v3953_v38, %v3882_v50  ;;  %v5080_v53 = vpop.f32.mrb[103].mxu1 }
 0x961   :  { %v3960_v54 = vadd.f32 %v5466_v43, %v3959_v1 }
 0x963   :  { %v4351_v59 = vmul.f32 -1.442695, %v3960_v54 }
 0x965   :  { %5393 = vpow2.f32 %v4351_v59 }
 0x96f   :  { %v5394_v57 = vpop.eup %5393 }
 0x970   :  { %v3964_v61 = vadd.f32 1.0, %v5394_v57 }
 0x972   :  { %5395 = vrcp.f32 %v3964_v61 }
 0x97c   :  { %v5396_v62 = vpop.eup %5395 }
 0x97d   :  { %3968 = vrot.lane.b32.xlu1 %v5396_v62, %s5493_s11  ;;  %s5467_s11 = scalar_lea.vmem %s4066_s19, 32 }
 0x97e   :  { %p5468_p0 = scmp.ne.s32.totalorder %s4066_s19, %s5467_s11  ;;  %p5473_p2 = scmp.lt.s32.totalorder %s5467_s11, %s5467_s11 }
 0x980   :  { %p5474_p3 = por %p5473_p2, %p5472_p1 }
 0x982   :  { %p5475_p4 = pnand %p5474_p3, %p5468_p0 }
 0x9ef   :  { %v3969_v63 = vpop.permute.xlu1 %3968 }
 0x9f0   :  { %v3971_v2 = vmul.f32 %v3969_v63, %v3960_v54 }
 0x9f2   :  { %v3973_v58 = vpack.c.bf16 %v3971_v2, %v3971_v2 }
 0x9f4   :  { %5102 = vmatmul.mubr.msk.bf16.vlgmr.msra.gmra.mrb[104].mxu1 %vm453_vm1, %v3973_v58 }
 0xac7   :  { %v4011_v0 = vpop.f32.mrb[104].mxu1 }
 0xac8   :  { %v4012_v3 = vadd.f32 %v4011_v0, %v6370_v56  ;;  %v5103_v55 = vpop.f32.mrb[105].mxu1 }
 0xac9   :  { %v4014_v4 = vpop.f32.mrb[106].mxu1 }
 0xaca   :  { %v4017_v5 = vpack.c.bf16 %v4012_v3, %v4012_v3  ;;  %v5104_v7 = vpop.f32.mrb[107].mxu1 }
 0xacc   :  { %5122 = vmatmul.mubr.bf16.vlgmr.msra.gmra.mrb[96].mxu0 %v4017_v5 }
 0xb9f   :  { %v4052_v8 = vpop.f32.mrb[96].mxu0 }
 0xba0   :  { %v4053_v9 = vadd.f32 %v4052_v8, %v6491_v17  ;;  %v5123_v11 = vpop.f32.mrb[97].mxu0 }
 0xba1   :  { %v4055_v6 = vpop.f32.mrb[98].mxu0 }
 0xba2   :  { %4059 = vst [vmem:[#allocation2 + $0x1] sm:$0x1] %v4053_v9  ;;  %v5124_v12 = vpop.f32.mrb[99].mxu0 }
 0xba3   :  { %5478 = shalt.err (!%p5475_p4)
}
 0xba4   :  { %s5479_s0 = scalar_lea.hbm %s6879_s10, 32 }
 0xba5   :  { %p5480_p5 = scmp.ne.s32.totalorder %s6879_s10, %s5479_s0  ;;  %p5483_p6 = scmp.lt.u32.totalorder %s5479_s0, %s6879_s10 }
 0xba7   :  { %p5485_p7 = pnand %p5483_p6, %p5480_p5 }
 0xba9   :  { %5488 = shalt.err (!%p5485_p7)
}
 0xbaa   :  { %s5496_s24 = smov 16   ;;  %s5497_s25 = smov 1  }
 0xbab   :  { %4071 = dma.vmem_to_hbm [thread:$0]  %s4066_s19, 32, %s6879_s10, [#allocation3], %s5496_s24, %s5496_s24, %s5497_s25  }
 0xbac   :  { %5489 = dma.done.wait [#allocation3], 32  }
 0xbad   :  { %5490 = vsyncadd [#allocation3], 4294967264 }
 0xbae   :  { %4075 = vsyncpa [#allocation3], 1 }

</bundles_post_ra>
